<compile_context>
chip_gen: v7x
topology: tpu7x:2x2x1
jax: 0.10.0
libtpu: 0.0.40
codegen_flags: <defaults>
</compile_context>

<pallas_src>
import functools

import numpy as np

import jax
import jax.numpy as jnp
from jax.experimental import pallas as pl
from jax.experimental.pallas import tpu as pltpu

NOISE_LEVEL = 0.0  # sr_default_params['noise_level']; nonlinearity = 'identity'


# ----------------------------------------------------------------------------
# Fused per-block kernel (bb images per grid step)
#   xp_ref   : (M, P)      bf16 patch rows for bb images (M = bb*HWp, P = C*p*p)
#   we/be    : (P, E) bf16, (1, E) f32     patch-embed weight / bias
#   g/beta   : (1, E), (1, E) f32          LayerNorm gamma / beta
#   w1/b1    : (9E, E) bf16, (1, E) f32    3x3 conv (im2col layout) / bias
#   w2       : (1, E) f32                  1x1 conv weight as a broadcast row
#   mask_ref : (9*M, E) f32                per-tap row-validity masks (constant)
#   b2_ref   : (1, 1) f32 in SMEM          1x1 conv bias (scalar)
#   o_ref    : (bb, 1, HWp) f32            lane-dense heatmap logits
# ----------------------------------------------------------------------------
def _fused_kernel(xp_ref, we_ref, be_ref, g_ref, beta_ref,
                  w1_ref, b1_ref, w2_ref, mask_ref, b2_ref,
                  o_ref, *, bb, Hp, Wp):
    HWp = Hp * Wp
    M = bb * HWp
    E = w1_ref.shape[-1]

    # --- stochastic resonance: identity nonlinearity, noise_level == 0 -> no-op
    x = xp_ref[...]                                              # (M, P) bf16

    # --- patch embed (bf16 MXU, f32 accumulate) + bias, LayerNorm in f32
    y = jnp.dot(x, we_ref[...], preferred_element_type=jnp.float32) + be_ref[...]
    mu = jnp.mean(y, axis=-1, keepdims=True)
    var = jnp.mean(jnp.square(y - mu), axis=-1, keepdims=True)
    f = (y - mu) * jax.lax.rsqrt(var + 1e-5) * g_ref[...] + beta_ref[...]

    # --- 3x3 conv (pad=1) fused into ONE (M, 9E) @ (9E, E) matmul.
    # Each tap is a statically row-shifted copy of f (zero filled at the block
    # edge); rows whose source pixel falls outside its own image are zeroed by
    # precomputed masks, so nothing leaks across image rows or between images.
    taps = []
    for k in range(9):
        dy, dx = k // 3 - 1, k % 3 - 1
        s = dy * Wp + dx                                        # |s| <= Wp + 1
        if s == 0:
            v = f
        elif s > 0:
            v = jnp.concatenate([f[s:, :], jnp.zeros((s, E), f.dtype)], axis=0)
        else:
            v = jnp.concatenate([jnp.zeros((-s, E), f.dtype), f[:M + s, :]], axis=0)
        if (dy, dx) != (0, 0):
            v = v * mask_ref[k * M:(k + 1) * M, :]              # zero invalid rows
        taps.append(v.astype(jnp.bfloat16))
    xc = jnp.concatenate(taps, axis=-1)                          # (M, 9E) bf16

    h = jnp.dot(xc, w1_ref[...], preferred_element_type=jnp.float32) + b1_ref[...]
    h = jnp.maximum(h, 0.0)                                      # ReLU (f32 VPU)

    # --- 1x1 conv (E -> 1): VPU multiply + lane reduce (no N=1 MXU pass),
    #     written per image as a lane-dense (1, HWp) row
    w2 = w2_ref[...]
    b2 = b2_ref[0, 0]                                            # scalar from SMEM
    for i in range(bb):                                          # bb small & static
        hi = h[i * HWp:(i + 1) * HWp, :]                         # 8-aligned slice
        heat_i = jnp.sum(hi * w2, axis=-1) + b2                  # (HWp,)
        o_ref[i, :, :] = heat_i.reshape(1, HWp)


def _build_tap_masks(Hp, Wp, bb, E):
    """Precomputed row-validity masks for the 9 conv taps, tiled over bb images."""
    HWp = Hp * Wp
    t = np.arange(HWp)
    hh, ww = t // Wp, t % Wp
    rows = []
    for k in range(9):
        dy, dx = k // 3 - 1, k % 3 - 1
        valid = ((hh + dy >= 0) & (hh + dy < Hp) &
                 (ww + dx >= 0) & (ww + dx < Wp)).astype(np.float32)
        rows.append(np.tile(valid, bb))                          # (bb*HWp,)
    m = np.concatenate(rows)[:, None]                            # (9*bb*HWp, 1)
    return jnp.asarray(np.broadcast_to(m, (9 * bb * HWp, E)))


def hybrid_sr_detector(x, params, *, patch_size=4, block_batch=None):
    """x: (B, C, H, W) float32, NCHW (matching the PyTorch module input)."""
    B, C, H, W = x.shape
    p = patch_size
    assert H % p == 0 and W % p == 0
    Hp, Wp = H // p, W // p
    HWp = Hp * Wp
    P = C * p * p
    E = params["w_embed"].shape[1]

    bb = block_batch if block_batch is not None else (2 if B % 2 == 0 else 1)
    assert B % bb == 0
    M = bb * HWp

    # glue: non-overlapping patch extraction == Conv2d(stride=kernel=p) im2col.
    # Left to XLA (one relayout of the input ahead of the kernel); doing this
    # 6-D transpose inside Mosaic would cost more than it saves at these sizes.
    xp = (x.reshape(B, C, Hp, p, Wp, p)
           .transpose(0, 2, 4, 1, 3, 5)
           .reshape(B * HWp, P)
           .astype(jnp.bfloat16))

    we = params["w_embed"].astype(jnp.bfloat16)                  # (P, E)
    w1 = params["w1"].astype(jnp.bfloat16)                       # (9E, E) native
    w2 = params["w2"].reshape(1, E)                              # 1x1 conv row

    masks = _build_tap_masks(Hp, Wp, bb, E)                      # (9*M, E) f32

    kernel = functools.partial(_fused_kernel, bb=bb, Hp=Hp, Wp=Wp)
    const2 = lambda b: (0, 0)

    heat = pl.pallas_call(
        kernel,
        out_shape=jax.ShapeDtypeStruct((B, 1, HWp), jnp.float32),
        grid=(B // bb,),
        in_specs=[
            pl.BlockSpec((M, P), lambda b: (b, 0)),              # bb images/step
            pl.BlockSpec((P, E), const2),                        # weights & masks:
            pl.BlockSpec((1, E), const2),                        # constant block
            pl.BlockSpec((1, E), const2),                        # index -> VMEM-
            pl.BlockSpec((1, E), const2),                        # resident across
            pl.BlockSpec((9 * E, E), const2),                    # grid steps
            pl.BlockSpec((1, E), const2),
            pl.BlockSpec((1, E), const2),
            pl.BlockSpec((9 * M, E), const2),
            pl.BlockSpec(memory_space=pltpu.MemorySpace.SMEM),   # b2 scalar
        ],
        out_specs=pl.BlockSpec((bb, 1, HWp), lambda b: (b, 0, 0)),
        compiler_params=pltpu.CompilerParams(
            dimension_semantics=("parallel",),                   # v7x: 2 TCs
        ),
    )(xp, we, params["b_embed"], params["gamma"], params["beta"],
      w1, params["b1"], w2, masks, params["b2"])

    # back to NCHW heatmap: (B, 1, H', W')
    return heat.reshape(B, 1, Hp, Wp)


def init_params(key, *, in_chans=1, patch_size=4, embed_dim=32):
    P = in_chans * patch_size * patch_size
    E = embed_dim
    ks = jax.random.split(key, 4)
    return {
        "w_embed": jax.random.normal(ks[0], (P, E), jnp.float32) * 0.05,
        "b_embed": jnp.zeros((1, E), jnp.float32),
        "gamma":   jnp.ones((1, E), jnp.float32),
        "beta":    jnp.zeros((1, E), jnp.float32),
        "w1":      jax.random.normal(ks[1], (9 * E, E), jnp.float32) * 0.02,
        "b1":      jnp.zeros((1, E), jnp.float32),
        "w2":      jax.random.normal(ks[2], (E, 1), jnp.float32) * 0.1,
        "b2":      jnp.zeros((1, 1), jnp.float32),
    }


def _reference(x, params, *, patch_size=4):
    """Pure-JAX f32 reference (patch-embed + LN + conv3x3 + ReLU + conv1x1)."""
    B, C, H, W = x.shape
    p = patch_size
    Hp, Wp = H // p, W // p
    E = params["w_embed"].shape[1]
    xp = (x.reshape(B, C, Hp, p, Wp, p)
           .transpose(0, 2, 4, 1, 3, 5)
           .reshape(B * Hp * Wp, C * p * p))
    y = xp @ params["w_embed"] + params["b_embed"]
    mu = y.mean(-1, keepdims=True)
    var = ((y - mu) ** 2).mean(-1, keepdims=True)
    f = (y - mu) / jnp.sqrt(var + 1e-5) * params["gamma"] + params["beta"]
    f = f.reshape(B, Hp, Wp, E)
    fp = jnp.pad(f, ((0, 0), (1, 1), (1, 1), (0, 0)))
    cols = [fp[:, dy:dy + Hp, dx:dx + Wp, :] for dy in range(3) for dx in range(3)]
    xc = jnp.concatenate(cols, axis=-1).reshape(B * Hp * Wp, 9 * E)
    h = jnp.maximum(xc @ params["w1"] + params["b1"], 0.0)
    heat = h @ params["w2"] + params["b2"]
    return heat.reshape(B, Hp, Wp, 1).transpose(0, 3, 1, 2)


if __name__ == "__main__":
    key = jax.random.PRNGKey(0)
    k_x, k_p = jax.random.split(key)

    # small shapes consistent with the module (patch_size=4, in_chans=1);
    # B=4 with block_batch=2 gives a 2-step grid so the batch actually splits
    # across v7x's two TensorCores.
    B, C, H, W = 4, 1, 32, 32
    x = jax.random.normal(k_x, (B, C, H, W), jnp.float32)
    params = init_params(k_p, in_chans=C, patch_size=4, embed_dim=32)

    fwd = jax.jit(lambda xx: hybrid_sr_detector(xx, params, patch_size=4,
                                                block_batch=2))
    out = jax.block_until_ready(fwd(x))

    assert out.shape == (B, 1, H // 4, W // 4), out.shape
    assert bool(jnp.all(jnp.isfinite(out)))

    ref = _reference(x, params, patch_size=4)
    max_err = float(jnp.max(jnp.abs(out - ref)))
    # tolerance sized for bf16 MXU operands with f32 accumulation
    assert jnp.allclose(out, ref, atol=2e-2, rtol=2e-2), max_err

    print("KERNEL_OK")
</pallas_src>

<mosaic_0001>
module attributes {stable_mosaic.version = 11 : i64} {
  func.func @_fused_kernel(%arg0: i32, %arg1: memref<128x16xbf16, #tpu.memory_space<vmem>>, %arg2: memref<16x32xbf16, #tpu.memory_space<vmem>>, %arg3: memref<1x32xf32, #tpu.memory_space<vmem>>, %arg4: memref<1x32xf32, #tpu.memory_space<vmem>>, %arg5: memref<1x32xf32, #tpu.memory_space<vmem>>, %arg6: memref<288x32xbf16, #tpu.memory_space<vmem>>, %arg7: memref<1x32xf32, #tpu.memory_space<vmem>>, %arg8: memref<1x32xf32, #tpu.memory_space<vmem>>, %arg9: memref<1152x32xf32, #tpu.memory_space<vmem>>, %arg10: memref<1x1xf32, #tpu.memory_space<smem>>, %arg11: memref<2x1x64xf32, #tpu.memory_space<vmem>>) attributes {dimension_semantics = [#tpu.dimension_semantics<parallel>], iteration_bounds = array<i64: 2>, scalar_prefetch = 0 : i64, scratch_operands = 0 : i64, tpu.core_type = #tpu.core_type<tc>, window_params = [{transform_indices = @transform_0, window_bounds = array<i64: 128, 16>}, {pipeline_mode = #tpu.pipeline_mode<synchronous>, transform_indices = @transform_1, window_bounds = array<i64: 16, 32>}, {pipeline_mode = #tpu.pipeline_mode<synchronous>, transform_indices = @transform_2, window_bounds = array<i64: 1, 32>}, {pipeline_mode = #tpu.pipeline_mode<synchronous>, transform_indices = @transform_3, window_bounds = array<i64: 1, 32>}, {pipeline_mode = #tpu.pipeline_mode<synchronous>, transform_indices = @transform_4, window_bounds = array<i64: 1, 32>}, {pipeline_mode = #tpu.pipeline_mode<synchronous>, transform_indices = @transform_5, window_bounds = array<i64: 288, 32>}, {pipeline_mode = #tpu.pipeline_mode<synchronous>, transform_indices = @transform_6, window_bounds = array<i64: 1, 32>}, {pipeline_mode = #tpu.pipeline_mode<synchronous>, transform_indices = @transform_7, window_bounds = array<i64: 1, 32>}, {pipeline_mode = #tpu.pipeline_mode<synchronous>, transform_indices = @transform_8, window_bounds = array<i64: 1152, 32>}, {transform_indices = @transform_9, window_bounds = array<i64: 1, 1>}, {transform_indices = @transform_10, window_bounds = array<i64: 2, 1, 64>}]} {
    %c0 = arith.constant 0 : index
    %c0_0 = arith.constant 0 : index
    %0 = vector.load %arg1[%c0, %c0_0] : memref<128x16xbf16, #tpu.memory_space<vmem>>, vector<128x16xbf16>
    %c0_1 = arith.constant 0 : index
    %c0_2 = arith.constant 0 : index
    %1 = vector.load %arg2[%c0_1, %c0_2] : memref<16x32xbf16, #tpu.memory_space<vmem>>, vector<16x32xbf16>
    %cst = arith.constant dense<0.000000e+00> : vector<128x32xf32>
    %2 = tpu.matmul %0, %1, %cst {dimension_numbers = #tpu.dot_dimension_numbers<[1], [0], [0], [1], [0, 0, 1, 1], [], []>} : vector<128x16xbf16>, vector<16x32xbf16>, vector<128x32xf32> -> vector<128x32xf32>
    %c0_3 = arith.constant 0 : index
    %c0_4 = arith.constant 0 : index
    %3 = vector.load %arg3[%c0_3, %c0_4] : memref<1x32xf32, #tpu.memory_space<vmem>>, vector<1x32xf32>
    %4 = vector.broadcast %3 : vector<1x32xf32> to vector<128x32xf32>
    %5 = arith.addf %2, %4 : vector<128x32xf32>
    %cst_5 = arith.constant dense<0.000000e+00> : vector<128xf32>
    %6 = vector.multi_reduction <add>, %5, %cst_5 [1] : vector<128x32xf32> to vector<128xf32>
    %7 = vector.shape_cast %6 : vector<128xf32> to vector<128x1xf32>
    %cst_6 = arith.constant 3.200000e+01 : f32
    %8 = vector.broadcast %cst_6 : f32 to vector<128x1xf32>
    %9 = arith.divf %7, %8 : vector<128x1xf32>
    %10 = vector.broadcast %9 : vector<128x1xf32> to vector<128x32xf32>
    %11 = arith.subf %5, %10 : vector<128x32xf32>
    %12 = arith.mulf %11, %11 : vector<128x32xf32>
    %cst_7 = arith.constant dense<0.000000e+00> : vector<128xf32>
    %13 = vector.multi_reduction <add>, %12, %cst_7 [1] : vector<128x32xf32> to vector<128xf32>
    %14 = vector.shape_cast %13 : vector<128xf32> to vector<128x1xf32>
    %cst_8 = arith.constant 3.200000e+01 : f32
    %15 = vector.broadcast %cst_8 : f32 to vector<128x1xf32>
    %16 = arith.divf %14, %15 : vector<128x1xf32>
    %17 = vector.broadcast %9 : vector<128x1xf32> to vector<128x32xf32>
    %18 = arith.subf %5, %17 : vector<128x32xf32>
    %cst_9 = arith.constant 9.99999974E-6 : f32
    %19 = vector.broadcast %cst_9 : f32 to vector<128x1xf32>
    %20 = arith.addf %16, %19 : vector<128x1xf32>
    %21 = math.rsqrt %20 : vector<128x1xf32>
    %22 = vector.broadcast %21 : vector<128x1xf32> to vector<128x32xf32>
    %23 = arith.mulf %18, %22 : vector<128x32xf32>
    %c0_10 = arith.constant 0 : index
    %c0_11 = arith.constant 0 : index
    %24 = vector.load %arg4[%c0_10, %c0_11] : memref<1x32xf32, #tpu.memory_space<vmem>>, vector<1x32xf32>
    %25 = vector.broadcast %24 : vector<1x32xf32> to vector<128x32xf32>
    %26 = arith.mulf %23, %25 : vector<128x32xf32>
    %c0_12 = arith.constant 0 : index
    %c0_13 = arith.constant 0 : index
    %27 = vector.load %arg5[%c0_12, %c0_13] : memref<1x32xf32, #tpu.memory_space<vmem>>, vector<1x32xf32>
    %28 = vector.broadcast %27 : vector<1x32xf32> to vector<128x32xf32>
    %29 = arith.addf %26, %28 : vector<128x32xf32>
    %cst_14 = arith.constant 0.000000e+00 : f32
    %30 = vector.broadcast %cst_14 : f32 to vector<9x32xf32>
    %31 = vector.extract_strided_slice %29 {offsets = [0, 0], sizes = [119, 32], strides = [1, 1]} : vector<128x32xf32> to vector<119x32xf32>
    %32 = tpu.concatenate %30, %31 in 0 : vector<9x32xf32>, vector<119x32xf32> -> vector<128x32xf32>
    %c0_15 = arith.constant 0 : index
    %c0_16 = arith.constant 0 : index
    %33 = vector.load %arg9[%c0_15, %c0_16] : memref<1152x32xf32, #tpu.memory_space<vmem>>, vector<128x32xf32>
    %34 = arith.mulf %32, %33 : vector<128x32xf32>
    %35 = arith.truncf %34 : vector<128x32xf32> to vector<128x32xbf16>
    %cst_17 = arith.constant 0.000000e+00 : f32
    %36 = vector.broadcast %cst_17 : f32 to vector<8x32xf32>
    %37 = vector.extract_strided_slice %29 {offsets = [0, 0], sizes = [120, 32], strides = [1, 1]} : vector<128x32xf32> to vector<120x32xf32>
    %38 = tpu.concatenate %36, %37 in 0 : vector<8x32xf32>, vector<120x32xf32> -> vector<128x32xf32>
    %c128 = arith.constant 128 : index
    %c0_18 = arith.constant 0 : index
    %39 = vector.load %arg9[%c128, %c0_18] : memref<1152x32xf32, #tpu.memory_space<vmem>>, vector<128x32xf32>
    %40 = arith.mulf %38, %39 : vector<128x32xf32>
    %41 = arith.truncf %40 : vector<128x32xf32> to vector<128x32xbf16>
    %cst_19 = arith.constant 0.000000e+00 : f32
    %42 = vector.broadcast %cst_19 : f32 to vector<7x32xf32>
    %43 = vector.extract_strided_slice %29 {offsets = [0, 0], sizes = [121, 32], strides = [1, 1]} : vector<128x32xf32> to vector<121x32xf32>
    %44 = tpu.concatenate %42, %43 in 0 : vector<7x32xf32>, vector<121x32xf32> -> vector<128x32xf32>
    %c256 = arith.constant 256 : index
    %c0_20 = arith.constant 0 : index
    %45 = vector.load %arg9[%c256, %c0_20] : memref<1152x32xf32, #tpu.memory_space<vmem>>, vector<128x32xf32>
    %46 = arith.mulf %44, %45 : vector<128x32xf32>
    %47 = arith.truncf %46 : vector<128x32xf32> to vector<128x32xbf16>
    %cst_21 = arith.constant 0.000000e+00 : f32
    %48 = vector.broadcast %cst_21 : f32 to vector<1x32xf32>
    %49 = vector.extract_strided_slice %29 {offsets = [0, 0], sizes = [127, 32], strides = [1, 1]} : vector<128x32xf32> to vector<127x32xf32>
    %50 = tpu.concatenate %48, %49 in 0 : vector<1x32xf32>, vector<127x32xf32> -> vector<128x32xf32>
    %c384 = arith.constant 384 : index
    %c0_22 = arith.constant 0 : index
    %51 = vector.load %arg9[%c384, %c0_22] : memref<1152x32xf32, #tpu.memory_space<vmem>>, vector<128x32xf32>
    %52 = arith.mulf %50, %51 : vector<128x32xf32>
    %53 = arith.truncf %52 : vector<128x32xf32> to vector<128x32xbf16>
    %54 = arith.truncf %29 : vector<128x32xf32> to vector<128x32xbf16>
    %55 = vector.extract_strided_slice %29 {offsets = [1, 0], sizes = [127, 32], strides = [1, 1]} : vector<128x32xf32> to vector<127x32xf32>
    %cst_23 = arith.constant 0.000000e+00 : f32
    %56 = vector.broadcast %cst_23 : f32 to vector<1x32xf32>
    %57 = tpu.concatenate %55, %56 in 0 : vector<127x32xf32>, vector<1x32xf32> -> vector<128x32xf32>
    %c640 = arith.constant 640 : index
    %c0_24 = arith.constant 0 : index
    %58 = vector.load %arg9[%c640, %c0_24] : memref<1152x32xf32, #tpu.memory_space<vmem>>, vector<128x32xf32>
    %59 = arith.mulf %57, %58 : vector<128x32xf32>
    %60 = arith.truncf %59 : vector<128x32xf32> to vector<128x32xbf16>
    %61 = vector.extract_strided_slice %29 {offsets = [7, 0], sizes = [121, 32], strides = [1, 1]} : vector<128x32xf32> to vector<121x32xf32>
    %cst_25 = arith.constant 0.000000e+00 : f32
    %62 = vector.broadcast %cst_25 : f32 to vector<7x32xf32>
    %63 = tpu.concatenate %61, %62 in 0 : vector<121x32xf32>, vector<7x32xf32> -> vector<128x32xf32>
    %c768 = arith.constant 768 : index
    %c0_26 = arith.constant 0 : index
    %64 = vector.load %arg9[%c768, %c0_26] : memref<1152x32xf32, #tpu.memory_space<vmem>>, vector<128x32xf32>
    %65 = arith.mulf %63, %64 : vector<128x32xf32>
    %66 = arith.truncf %65 : vector<128x32xf32> to vector<128x32xbf16>
    %67 = vector.extract_strided_slice %29 {offsets = [8, 0], sizes = [120, 32], strides = [1, 1]} : vector<128x32xf32> to vector<120x32xf32>
    %cst_27 = arith.constant 0.000000e+00 : f32
    %68 = vector.broadcast %cst_27 : f32 to vector<8x32xf32>
    %69 = tpu.concatenate %67, %68 in 0 : vector<120x32xf32>, vector<8x32xf32> -> vector<128x32xf32>
    %c896 = arith.constant 896 : index
    %c0_28 = arith.constant 0 : index
    %70 = vector.load %arg9[%c896, %c0_28] : memref<1152x32xf32, #tpu.memory_space<vmem>>, vector<128x32xf32>
    %71 = arith.mulf %69, %70 : vector<128x32xf32>
    %72 = arith.truncf %71 : vector<128x32xf32> to vector<128x32xbf16>
    %73 = vector.extract_strided_slice %29 {offsets = [9, 0], sizes = [119, 32], strides = [1, 1]} : vector<128x32xf32> to vector<119x32xf32>
    %cst_29 = arith.constant 0.000000e+00 : f32
    %74 = vector.broadcast %cst_29 : f32 to vector<9x32xf32>
    %75 = tpu.concatenate %73, %74 in 0 : vector<119x32xf32>, vector<9x32xf32> -> vector<128x32xf32>
    %c1024 = arith.constant 1024 : index
    %c0_30 = arith.constant 0 : index
    %76 = vector.load %arg9[%c1024, %c0_30] : memref<1152x32xf32, #tpu.memory_space<vmem>>, vector<128x32xf32>
    %77 = arith.mulf %75, %76 : vector<128x32xf32>
    %78 = arith.truncf %77 : vector<128x32xf32> to vector<128x32xbf16>
    %79 = tpu.concatenate %35, %41, %47, %53, %54, %60, %66, %72, %78 in 1 : vector<128x32xbf16>, vector<128x32xbf16>, vector<128x32xbf16>, vector<128x32xbf16>, vector<128x32xbf16>, vector<128x32xbf16>, vector<128x32xbf16>, vector<128x32xbf16>, vector<128x32xbf16> -> vector<128x288xbf16>
    %c0_31 = arith.constant 0 : index
    %c0_32 = arith.constant 0 : index
    %80 = vector.load %arg6[%c0_31, %c0_32] : memref<288x32xbf16, #tpu.memory_space<vmem>>, vector<288x32xbf16>
    %cst_33 = arith.constant dense<0.000000e+00> : vector<128x32xf32>
    %81 = tpu.matmul %79, %80, %cst_33 {dimension_numbers = #tpu.dot_dimension_numbers<[1], [0], [0], [1], [0, 0, 1, 1], [], []>} : vector<128x288xbf16>, vector<288x32xbf16>, vector<128x32xf32> -> vector<128x32xf32>
    %c0_34 = arith.constant 0 : index
    %c0_35 = arith.constant 0 : index
    %82 = vector.load %arg7[%c0_34, %c0_35] : memref<1x32xf32, #tpu.memory_space<vmem>>, vector<1x32xf32>
    %83 = vector.broadcast %82 : vector<1x32xf32> to vector<128x32xf32>
    %84 = arith.addf %81, %83 : vector<128x32xf32>
    %cst_36 = arith.constant 0.000000e+00 : f32
    %85 = vector.broadcast %cst_36 : f32 to vector<128x32xf32>
    %86 = arith.maximumf %84, %85 : vector<128x32xf32>
    %c0_37 = arith.constant 0 : index
    %c0_38 = arith.constant 0 : index
    %87 = vector.load %arg8[%c0_37, %c0_38] : memref<1x32xf32, #tpu.memory_space<vmem>>, vector<1x32xf32>
    %c0_39 = arith.constant 0 : index
    %c0_40 = arith.constant 0 : index
    %88 = memref.load %arg10[%c0_39, %c0_40] : memref<1x1xf32, #tpu.memory_space<smem>>
    %89 = vector.extract_strided_slice %86 {offsets = [0, 0], sizes = [64, 32], strides = [1, 1]} : vector<128x32xf32> to vector<64x32xf32>
    %90 = vector.broadcast %87 : vector<1x32xf32> to vector<64x32xf32>
    %91 = arith.mulf %89, %90 : vector<64x32xf32>
    %cst_41 = arith.constant dense<0.000000e+00> : vector<64xf32>
    %92 = vector.multi_reduction <add>, %91, %cst_41 [1] : vector<64x32xf32> to vector<64xf32>
    %93 = vector.broadcast %88 : f32 to vector<64xf32>
    %94 = arith.addf %92, %93 : vector<64xf32>
    %95 = vector.shape_cast %94 : vector<64xf32> to vector<1x64xf32>
    %c0_42 = arith.constant 0 : index
    %c0_43 = arith.constant 0 : index
    %c0_44 = arith.constant 0 : index
    %96 = vector.load %arg11[%c0_42, %c0_43, %c0_44] : memref<2x1x64xf32, #tpu.memory_space<vmem>>, vector<1x1x64xf32>
    %97 = vector.shape_cast %96 : vector<1x1x64xf32> to vector<1x64xf32>
    %98 = vector.shape_cast %95 : vector<1x64xf32> to vector<1x1x64xf32>
    tpu.vector_store %arg11[%c0_42, %c0_43, %c0_44], %98 {strides = array<i32>} : memref<2x1x64xf32, #tpu.memory_space<vmem>>, vector<1x1x64xf32>,
    %99 = vector.extract_strided_slice %86 {offsets = [64, 0], sizes = [64, 32], strides = [1, 1]} : vector<128x32xf32> to vector<64x32xf32>
    %100 = vector.broadcast %87 : vector<1x32xf32> to vector<64x32xf32>
    %101 = arith.mulf %99, %100 : vector<64x32xf32>
    %cst_45 = arith.constant dense<0.000000e+00> : vector<64xf32>
    %102 = vector.multi_reduction <add>, %101, %cst_45 [1] : vector<64x32xf32> to vector<64xf32>
    %103 = vector.broadcast %88 : f32 to vector<64xf32>
    %104 = arith.addf %102, %103 : vector<64xf32>
    %105 = vector.shape_cast %104 : vector<64xf32> to vector<1x64xf32>
    %c1 = arith.constant 1 : index
    %c0_46 = arith.constant 0 : index
    %c0_47 = arith.constant 0 : index
    %106 = vector.load %arg11[%c1, %c0_46, %c0_47] : memref<2x1x64xf32, #tpu.memory_space<vmem>>, vector<1x1x64xf32>
    %107 = vector.shape_cast %106 : vector<1x1x64xf32> to vector<1x64xf32>
    %108 = vector.shape_cast %105 : vector<1x64xf32> to vector<1x1x64xf32>
    tpu.vector_store %arg11[%c1, %c0_46, %c0_47], %108 {strides = array<i32>} : memref<2x1x64xf32, #tpu.memory_space<vmem>>, vector<1x1x64xf32>,
    return
  }
  func.func @transform_0(%arg0: i32) -> (i32, i32) {
    %c0_i32 = arith.constant 0 : i32
    %c0_i32_0 = arith.constant 0 : i32
    return %arg0, %c0_i32 : i32, i32
  }
  func.func @transform_1(%arg0: i32) -> (i32, i32) {
    %c0_i32 = arith.constant 0 : i32
    %c0_i32_0 = arith.constant 0 : i32
    %c0_i32_1 = arith.constant 0 : i32
    return %c0_i32, %c0_i32_0 : i32, i32
  }
  func.func @transform_2(%arg0: i32) -> (i32, i32) {
    %c0_i32 = arith.constant 0 : i32
    %c0_i32_0 = arith.constant 0 : i32
    %c0_i32_1 = arith.constant 0 : i32
    return %c0_i32, %c0_i32_0 : i32, i32
  }
  func.func @transform_3(%arg0: i32) -> (i32, i32) {
    %c0_i32 = arith.constant 0 : i32
    %c0_i32_0 = arith.constant 0 : i32
    %c0_i32_1 = arith.constant 0 : i32
    return %c0_i32, %c0_i32_0 : i32, i32
  }
  func.func @transform_4(%arg0: i32) -> (i32, i32) {
    %c0_i32 = arith.constant 0 : i32
    %c0_i32_0 = arith.constant 0 : i32
    %c0_i32_1 = arith.constant 0 : i32
    return %c0_i32, %c0_i32_0 : i32, i32
  }
  func.func @transform_5(%arg0: i32) -> (i32, i32) {
    %c0_i32 = arith.constant 0 : i32
    %c0_i32_0 = arith.constant 0 : i32
    %c0_i32_1 = arith.constant 0 : i32
    return %c0_i32, %c0_i32_0 : i32, i32
  }
  func.func @transform_6(%arg0: i32) -> (i32, i32) {
    %c0_i32 = arith.constant 0 : i32
    %c0_i32_0 = arith.constant 0 : i32
    %c0_i32_1 = arith.constant 0 : i32
    return %c0_i32, %c0_i32_0 : i32, i32
  }
  func.func @transform_7(%arg0: i32) -> (i32, i32) {
    %c0_i32 = arith.constant 0 : i32
    %c0_i32_0 = arith.constant 0 : i32
    %c0_i32_1 = arith.constant 0 : i32
    return %c0_i32, %c0_i32_0 : i32, i32
  }
  func.func @transform_8(%arg0: i32) -> (i32, i32) {
    %c0_i32 = arith.constant 0 : i32
    %c0_i32_0 = arith.constant 0 : i32
    %c0_i32_1 = arith.constant 0 : i32
    return %c0_i32, %c0_i32_0 : i32, i32
  }
  func.func @transform_9(%arg0: i32) -> (i32, i32) {
    %c0_i32 = arith.constant 0 : i32
    %c0_i32_0 = arith.constant 0 : i32
    %c0_i32_1 = arith.constant 0 : i32
    return %c0_i32, %c0_i32_0 : i32, i32
  }
  func.func @transform_10(%arg0: i32) -> (i32, i32, i32) {
    %c0_i32 = arith.constant 0 : i32
    %c0_i32_0 = arith.constant 0 : i32
    %c0_i32_1 = arith.constant 0 : i32
    return %arg0, %c0_i32, %c0_i32_0 : i32, i32, i32
  }
}

</mosaic_0001>

<bundles_post_ra>
// kernel: _lambda_.1
= control target key start
LH: loop header
LB: loop body
LE: loop exit
PB: predicated region body
PF: predicated region fallthrough
CT: control target
= control target key end

     0   :  { %s2507_s15 = smov 0   ;;  %s4136_s0 = inlined_call_operand.vmem [shape: bf16[256,16], index: 0, kind: input, shape index: {}]   ;;  %s4137_s1 = inlined_call_operand.vmem [shape: bf16[16,32], index: 1, kind: input, shape index: {}]   ;;  %s4138_s2 = inlined_call_operand.vmem [shape: f32[1,32], index: 2, kind: input, shape index: {}, may-alias: {2,4,6}]   ;;  %s4139_s3 = inlined_call_operand.vmem [shape: f32[1,32], index: 3, kind: input, shape index: {}]   ;;  %s4140_s4 = inlined_call_operand.vmem [shape: f32[1,32], index: 4, kind: input, shape index: {}, may-alias: {2,4,6}]   ;;  %s4141_s5 = inlined_call_operand.vmem [shape: bf16[288,32], index: 5, kind: input, shape index: {}]   ;;  %s4142_s6 = inlined_call_operand.vmem [shape: f32[1,32], index: 6, kind: input, shape index: {}, may-alias: {2,4,6}]   ;;  %s4143_s7 = inlined_call_operand.vmem [shape: f32[1,32], index: 7, kind: input, shape index: {}]   ;;  %s4144_s8 = inlined_call_operand.vmem [shape: f32[1152,32], index: 8, kind: input, shape index: {}]   ;;  %s4145_s9 = inlined_call_operand.<no memory space> [shape: f32[1,1], index: 9, kind: input, shape index: {}]   ;;  %s4146_s10 = inlined_call_operand.vmem [shape: f32[4,1,64], index: 10, kind: output, shape index: {}]  }
   0x1   :  { %15 = sst [smem:[#allocation2]] %s4145_s9 }
   0x2 LB: > { %s2172_s16 = sadd.s32 4294967295, %s2444_s15   ;;  %p2176_p0 = scmp.ge.s32.totalorder %s2444_s15, 1  ;;  %s2444_s15 = sphi %s2507_s15, %s21_s15  }
   0x3   : > { %p314_p1 = scmp.lt.s32.totalorder %s2444_s15, 3 }
   0x5   : > { %p315_p2 = pnand %p2176_p0, %p314_p1 }
   0x7   : > { %318 = sbr.rel (%p315_p2) target bundleno = 1153 (0x481), region = 60 }
   0xe   : > { %v2379_v0 = vld [vmem:[%s4137_s1] sm:$0xff]   ;;  %s2177_s9 = sshll.u32 %s2172_s16, 4  ;;  %vm434_vm0 = vcmask 130048   ;;  %vm556_vm1 = vcmask 261120   ;;  %vm954_vm2 = vcmask 1046528   ;;  %vm827_vm3 = vcmask 1040384  }
   0xf   : > { %p352_p3 = scmp.lt.s32.totalorder %s2177_s9, 31  ;;  %2314 = vmatprep.subr.bf16.mxu0 %v2379_v0  ;;  %v2180_v9 = vld [vmem:[%s4138_s2] ss:$0 sm:$0xff]  ;;  %s2446_s20 = smov 32   ;;  %vm1426_vm4 = vcmask 523264   ;;  %vm1443_vm5 = vcmask 785408  }
  0x10   : > { %2315 = vmatpush3.bf16.msra.mxu0 %v2379_v0  ;;  %s2447_s13 = smov 64   ;;  %s2448_s28 = smov 96   ;;  %vm1985_vm6 = vcmask 130112   ;;  %vm1992_vm7 = vcmask 195712   ;;  %vm1999_vm8 = vcmask 261312   ;;  %vm2006_vm9 = vcmask 326912  }
  0x11   : > { %s4296_s9 = smov (!%p352_p3, %s2177_s9), 31  ;;  %s1918_s24 = sld [smem:[#allocation2]]  ;;  %vm2013_vm10 = vcmask 392512   ;;  %vm2020_vm11 = vcmask 458112   ;;  %vm2027_vm12 = vcmask 523712   ;;  %vm2030_vm13 = vcmask 516096  }
  0x12   : > { %s2178_s19 = sshll.u32 %s4296_s9, 2 }
  0x13   : > { %s355_s22 = scalar_lea.vmem %s4136_s0, %s2178_s19 }
  0x14   : > { %v2380_v1 = vld [vmem:[%s355_s22] sm:$0xff]   ;;  %v2381_v2 = vld [vmem:[%s355_s22 + $0x8] sm:$0xff]   ;;  %v2382_v3 = vld [vmem:[%s355_s22 + $0x10] sm:$0xff]  }
  0x15   : > { %2316 = vmatprep.mubr.msk.bf16.mxu0 %vm434_vm0, %v2380_v1  ;;  %v2383_v4 = vld [vmem:[%s355_s22 + $0x18] sm:$0xff]   ;;  %v2384_v5 = vld [vmem:[%s355_s22 + $0x20] sm:$0xff]   ;;  %v2385_v6 = vld [vmem:[%s355_s22 + $0x28] sm:$0xff]  }
  0x16   : > { %2317 = vmatmul.mubr.msk.bf16.vlgmr.msra.gmra.mrb[0].mxu0 %vm434_vm0, %v2381_v2  ;;  %v2386_v7 = vld [vmem:[%s355_s22 + $0x30] sm:$0xff]   ;;  %v2387_v8 = vld [vmem:[%s355_s22 + $0x38] sm:$0xff]  }
  0x17   : > { %2320 = vmatprep.mubr.msk.bf16.mxu0 %vm434_vm0, %v2382_v3 }
  0x1e   : > { %2321 = vmatmul.mubr.msk.bf16.gmra.mrb[4].mxu0 %vm434_vm0, %v2383_v4 }
  0x1f   : > { %2324 = vmatprep.mubr.msk.bf16.mxu0 %vm434_vm0, %v2384_v5 }
  0x26   : > { %2325 = vmatmul.mubr.msk.bf16.gmra.mrb[8].mxu0 %vm434_vm0, %v2385_v6 }
  0x27   : > { %2328 = vmatprep.mubr.msk.bf16.mxu0 %vm434_vm0, %v2386_v7 }
  0x2e   : > { %2329 = vmatmul.mubr.msk.bf16.gmra.mrb[12].mxu0 %vm434_vm0, %v2387_v8 }
  0xe9   : > { %v2318_v10 = vpop.f32.mrb[0].mxu0 }
  0xea   : > { %v2534_v11 = vadd.f32 %v2318_v10, %v2180_v9  ;;  %v493_v12 = vpop.f32.mrb[1].mxu0 }
  0xeb   : > { %v2319_v13 = vpop.f32.mrb[2].mxu0  ;;  %v2558_v32 = vadd.f32 %v2180_v9, %v493_v12 }
  0xec   : > { %v2536_v14 = vadd.f32 %v2319_v13, %v2180_v9  ;;  %v496_v15 = vpop.f32.mrb[3].mxu0  ;;  %v563_v16 = vsel %vm556_vm1, %v2534_v11, 0.0 }
  0xed   : > { %564 = vadd.xlane.f32.xlu0 %v563_v16  ;;  %v2544_v23 = vadd.f32 %v2180_v9, %v496_v15  ;;  %v557_v39 = vsel %vm556_vm1, %v2558_v32, 0.0 }
  0xee   : > { %v566_v17 = vsel %vm556_vm1, %v2536_v14, 0.0 }
  0xef   : > { %v560_v29 = vsel %vm556_vm1, %v2544_v23, 0.0 }
  0xf1   : > { %567 = vadd.xlane.f32.xlu0 %v566_v17  ;;  %v2322_v18 = vpop.f32.mrb[4].mxu0 }
  0xf2   : > { %v509_v19 = vpop.f32.mrb[5].mxu0  ;;  %v2554_v28 = vadd.f32 %v2322_v18, %v2180_v9 }
  0xf3   : > { %v2542_v20 = vadd.f32 %v2180_v9, %v509_v19  ;;  %v2323_v21 = vpop.f32.mrb[6].mxu0 }
  0xf4   : > { %v512_v22 = vpop.f32.mrb[7].mxu0  ;;  %v2550_v26 = vadd.f32 %v2323_v21, %v2180_v9  ;;  %v575_v38 = vsel %vm556_vm1, %v2554_v28, 0.0 }
  0xf5   : > { %v2546_v24 = vadd.f32 %v2180_v9, %v512_v22  ;;  %v569_v25 = vsel %vm556_vm1, %v2542_v20, 0.0 }
  0xf6   : > { %570 = vadd.xlane.f32.xlu1 %v569_v25  ;;  %v578_v33 = vsel %vm556_vm1, %v2550_v26, 0.0 }
  0xf7   : > { %v572_v27 = vsel %vm556_vm1, %v2546_v24, 0.0 }
  0xf8   : > { %573 = vadd.xlane.f32.xlu0 %v572_v27 }
  0xf9   : > { %v2326_v30 = vpop.f32.mrb[8].mxu0 }
  0xfa   : > { %561 = vadd.xlane.f32.xlu1 %v560_v29  ;;  %v525_v31 = vpop.f32.mrb[9].mxu0  ;;  %v2564_v37 = vadd.f32 %v2326_v30, %v2180_v9 }
  0xfb   : > { %v2562_v34 = vadd.f32 %v2180_v9, %v525_v31  ;;  %v2327_v35 = vpop.f32.mrb[10].mxu0 }
  0xfc   : > { %579 = vadd.xlane.f32.xlu0 %v578_v33  ;;  %v528_v36 = vpop.f32.mrb[11].mxu0  ;;  %v587_v43 = vsel %vm556_vm1, %v2564_v37, 0.0  ;;  %v2576_v45 = vadd.f32 %v2327_v35, %v2180_v9 }
  0xfd   : > { %v2570_v40 = vadd.f32 %v2180_v9, %v528_v36  ;;  %v581_v41 = vsel %vm556_vm1, %v2562_v34, 0.0 }
  0xfe   : > { %576 = vadd.xlane.f32.xlu1 %v575_v38  ;;  %v590_v53 = vsel %vm556_vm1, %v2576_v45, 0.0 }
  0xff   : > { %v584_v47 = vsel %vm556_vm1, %v2570_v40, 0.0 }
 0x100   : > { %558 = vadd.xlane.f32.xlu0 %v557_v39 }
 0x101   : > { %v2330_v42 = vpop.f32.mrb[12].mxu0 }
 0x102   : > { %582 = vadd.xlane.f32.xlu1 %v581_v41  ;;  %v541_v44 = vpop.f32.mrb[13].mxu0  ;;  %v2582_v50 = vadd.f32 %v2330_v42, %v2180_v9 }
 0x103   : > { %v2578_v46 = vadd.f32 %v2180_v9, %v541_v44  ;;  %v2331_v48 = vpop.f32.mrb[14].mxu0 }
 0x104   : > { %588 = vadd.xlane.f32.xlu0 %v587_v43  ;;  %v544_v49 = vpop.f32.mrb[15].mxu0  ;;  %v599_v54 = vsel %vm556_vm1, %v2582_v50, 0.0  ;;  %v2592_v55 = vadd.f32 %v2331_v48, %v2180_v9 }
 0x105   : > { %v593_v51 = vsel %vm556_vm1, %v2578_v46, 0.0  ;;  %v2586_v52 = vadd.f32 %v2180_v9, %v544_v49 }
 0x106   : > { %585 = vadd.xlane.f32.xlu1 %v584_v47  ;;  %v602_v57 = vsel %vm556_vm1, %v2592_v55, 0.0 }
 0x107   : > { %v596_v56 = vsel %vm556_vm1, %v2586_v52, 0.0 }
 0x108   : > { %594 = vadd.xlane.f32.xlu0 %v593_v51 }
 0x10a   : > { %591 = vadd.xlane.f32.xlu1 %v590_v53 }
 0x10c   : > { %600 = vadd.xlane.f32.xlu0 %v599_v54 }
 0x10e   : > { %597 = vadd.xlane.f32.xlu1 %v596_v56 }
 0x112   : > { %603 = vadd.xlane.f32.xlu1 %v602_v57 }
 0x17a   : > { %v565_v58 = vpop.xlane.xlu0 %564 }
 0x17b   : > { %v608_v59 = vmul.f32 0.03125, %v565_v58 }
 0x17d   : > { %v2599_v60 = vsub.f32 %v2534_v11, %v608_v59 }
 0x17e   : > { %v568_v61 = vpop.xlane.xlu0 %567 }
 0x17f   : > { %v609_v62 = vmul.f32 0.03125, %v568_v61  ;;  %v640_v63 = vmul.f32 %v2599_v60, %v2599_v60 }
 0x181   : > { %v2604_v0 = vsub.f32 %v2536_v14, %v609_v62  ;;  %v660_v1 = vsel %vm556_vm1, %v640_v63, 0.0 }
 0x182   : > { %661 = vadd.xlane.f32.xlu0 %v660_v1 }
 0x183   : > { %v571_v2 = vpop.xlane.xlu1 %570  ;;  %v641_v3 = vmul.f32 %v2604_v0, %v2604_v0 }
 0x184   : > { %v610_v4 = vmul.f32 0.03125, %v571_v2 }
 0x185   : > { %v574_v5 = vpop.xlane.xlu0 %573  ;;  %v663_v6 = vsel %vm556_vm1, %v641_v3, 0.0 }
 0x186   : > { %v2611_v7 = vsub.f32 %v2542_v20, %v610_v4  ;;  %v611_v8 = vmul.f32 0.03125, %v574_v5  ;;  %664 = vadd.xlane.f32.xlu1 %v663_v6 }
 0x187   : > { %v562_v9 = vpop.xlane.xlu1 %561 }
 0x188   : > { %v2614_v10 = vsub.f32 %v2546_v24, %v611_v8  ;;  %v607_v11 = vmul.f32 0.03125, %v562_v9  ;;  %v642_v12 = vmul.f32 %v2611_v7, %v2611_v7 }
 0x189   : > { %v580_v13 = vpop.xlane.xlu0 %579 }
 0x18a   : > { %v2619_v14 = vsub.f32 %v2544_v23, %v607_v11  ;;  %v613_v15 = vmul.f32 0.03125, %v580_v13  ;;  %v666_v16 = vsel %vm556_vm1, %v642_v12, 0.0  ;;  %v643_v17 = vmul.f32 %v2614_v10, %v2614_v10 }
 0x18b   : > { %v577_v18 = vpop.xlane.xlu1 %576  ;;  %667 = vadd.xlane.f32.xlu0 %v666_v16 }
 0x18c   : > { %v2625_v19 = vsub.f32 %v2550_v26, %v613_v15  ;;  %v612_v20 = vmul.f32 0.03125, %v577_v18  ;;  %v639_v21 = vmul.f32 %v2619_v14, %v2619_v14  ;;  %v669_v24 = vsel %vm556_vm1, %v643_v17, 0.0 }
 0x18d   : > { %v559_v22 = vpop.xlane.xlu0 %558 }
 0x18e   : > { %v2631_v23 = vsub.f32 %v2554_v28, %v612_v20  ;;  %v606_v25 = vmul.f32 0.03125, %v559_v22  ;;  %v657_v27 = vsel %vm556_vm1, %v639_v21, 0.0  ;;  %v645_v29 = vmul.f32 %v2625_v19, %v2625_v19  ;;  %v2388_v22 = vld [vmem:[%s4141_s5 + $0x40] sm:$0xff]  }
 0x18f   : > { %658 = vadd.xlane.f32.xlu1 %v657_v27  ;;  %v583_v30 = vpop.xlane.xlu1 %582  ;;  %670 = vadd.xlane.f32.xlu0 %v669_v24  ;;  %v2389_v24 = vld [vmem:[%s4141_s5] sm:$0xff]  }
 0x190   : > { %v2637_v26 = vsub.f32 %v2558_v32, %v606_v25  ;;  %v614_v31 = vmul.f32 0.03125, %v583_v30  ;;  %v644_v33 = vmul.f32 %v2631_v23, %v2631_v23  ;;  %v675_v28 = vsel %vm556_vm1, %v645_v29, 0.0  ;;  %v2390_v25 = vld [vmem:[%s4141_s5 + $0x48] sm:$0xff]   ;;  %2240 = vmatprep.subr.bf16.mxu0 %v2388_v22  ;;  %2352 = vmatprep.subr.bf16.mxu1 %v2388_v22 }
 0x191   : > { %v589_v35 = vpop.xlane.xlu0 %588  ;;  %2241 = vmatpush3.bf16.msra.mxu0 %v2389_v24  ;;  %v2391_v30 = vld [vmem:[%s4141_s5 + $0x8] sm:$0xff]   ;;  %2360 = vmatpush3.bf16.msra.mxu1 %v2389_v24 }
 0x192   : > { %v2643_v36 = vsub.f32 %v2562_v34, %v614_v31  ;;  %v616_v38 = vmul.f32 0.03125, %v589_v35  ;;  %v672_v39 = vsel %vm556_vm1, %v644_v33, 0.0  ;;  %v638_v41 = vmul.f32 %v2637_v26, %v2637_v26  ;;  %2242 = vmatprep.subr.bf16.mxu0 %v2390_v25  ;;  %v2392_v33 = vld [vmem:[%s4141_s5 + $0x50] sm:$0xff]   ;;  %2353 = vmatprep.subr.bf16.mxu1 %v2390_v25  ;;  %v1179_v24 = vld [vmem:[%s4144_s8 + $0x388] sm:$0xff] }
 0x193   : > { %673 = vadd.xlane.f32.xlu1 %v672_v39  ;;  %v586_v42 = vpop.xlane.xlu1 %585  ;;  %676 = vadd.xlane.f32.xlu0 %v675_v28 }
 0x194   : > { %v2649_v32 = vsub.f32 %v2564_v37, %v616_v38  ;;  %v646_v43 = vmul.f32 %v2643_v36, %v2643_v36  ;;  %v615_v47 = vmul.f32 0.03125, %v586_v42  ;;  %v654_v48 = vsel %vm556_vm1, %v638_v41, 0.0 }
 0x195   : > { %v595_v44 = vpop.xlane.xlu0 %594  ;;  %2243 = vmatpush3.bf16.msra.mxu0 %v2391_v30  ;;  %2361 = vmatpush3.bf16.msra.mxu1 %v2391_v30 }
 0x196   : > { %v678_v34 = vsel %vm556_vm1, %v646_v43, 0.0  ;;  %v648_v49 = vmul.f32 %v2649_v32, %v2649_v32  ;;  %v618_v53 = vmul.f32 0.03125, %v595_v44  ;;  %v2658_v37 = vsub.f32 %v2570_v40, %v615_v47  ;;  %2244 = vmatprep.subr.bf16.mxu0 %v2392_v33  ;;  %2354 = vmatprep.subr.bf16.mxu1 %v2392_v33  ;;  %v1180_v33 = vld [vmem:[%s4144_s8 + $0x390] sm:$0xff] }
 0x197   : > { %679 = vadd.xlane.f32.xlu1 %v678_v34  ;;  %v592_v51 = vpop.xlane.xlu1 %591  ;;  %655 = vadd.xlane.f32.xlu0 %v654_v48  ;;  %v2713_v48 = vld [vmem:[%s4139_s3] ss:$0 sm:$0xff] }
 0x198   : > { %v617_v54 = vmul.f32 0.03125, %v592_v51  ;;  %v684_v59 = vsel %vm556_vm1, %v648_v49, 0.0  ;;  %v2665_v62 = vsub.f32 %v2578_v46, %v618_v53  ;;  %v647_v3 = vmul.f32 %v2658_v37, %v2658_v37 }
 0x199   : > { %v601_v56 = vpop.xlane.xlu0 %600 }
 0x19a   : > { %v2661_v57 = vsub.f32 %v2576_v45, %v617_v54  ;;  %v620_v58 = vmul.f32 0.03125, %v601_v56  ;;  %v681_v9 = vsel %vm556_vm1, %v647_v3, 0.0 }
 0x19b   : > { %v598_v61 = vpop.xlane.xlu1 %597  ;;  %685 = vadd.xlane.f32.xlu0 %v684_v59 }
 0x19c   : > { %v2668_v63 = vsub.f32 %v2582_v50, %v620_v58  ;;  %v649_v1 = vmul.f32 %v2661_v57, %v2661_v57  ;;  %v619_v2 = vmul.f32 0.03125, %v598_v61  ;;  %v650_v50 = vmul.f32 %v2665_v62, %v2665_v62 }
 0x19e   : > { %v687_v40 = vsel %vm556_vm1, %v649_v1, 0.0  ;;  %v652_v45 = vmul.f32 %v2668_v63, %v2668_v63  ;;  %v2681_v6 = vsub.f32 %v2586_v52, %v619_v2  ;;  %v690_v11 = vsel %vm556_vm1, %v650_v50, 0.0 }
 0x19f   : > { %688 = vadd.xlane.f32.xlu1 %v687_v40  ;;  %v604_v4 = vpop.xlane.xlu1 %603 }
 0x1a0   : > { %v621_v5 = vmul.f32 0.03125, %v604_v4  ;;  %v696_v46 = vsel %vm556_vm1, %v652_v45, 0.0  ;;  %v651_v15 = vmul.f32 %v2681_v6, %v2681_v6 }
 0x1a1   : > { %697 = vadd.xlane.f32.xlu0 %v696_v46 }
 0x1a2   : > { %v2684_v8 = vsub.f32 %v2592_v55, %v621_v5  ;;  %v693_v52 = vsel %vm556_vm1, %v651_v15, 0.0  ;;  %v913_v15 = vld [vmem:[%s4144_s8 + $0x80] sm:$0xff] }
 0x1a3   : > { %682 = vadd.xlane.f32.xlu1 %v681_v9  ;;  %v2393_v9 = vld [vmem:[%s4141_s5 + $0x10] sm:$0xff]   ;;  %v2745_v22 = vmul.f32 0.0, %v913_v15 }
 0x1a4   : > { %v653_v12 = vmul.f32 %v2684_v8, %v2684_v8  ;;  %2245 = vmatpush3.bf16.msra.mxu0 %v2393_v9  ;;  %2362 = vmatpush3.bf16.msra.mxu1 %v2393_v9 }
 0x1a5   : > { %691 = vadd.xlane.f32.xlu0 %v690_v11  ;;  %v2394_v11 = vld [vmem:[%s4141_s5 + $0x58] sm:$0xff]  }
 0x1a6   : > { %v699_v13 = vsel %vm556_vm1, %v653_v12, 0.0  ;;  %2246 = vmatprep.subr.bf16.mxu0 %v2394_v11  ;;  %2355 = vmatprep.subr.bf16.mxu1 %v2394_v11  ;;  %v918_v11 = vld [vmem:[%s4144_s8 + $0xa8] sm:$0xff] }
 0x1a7   : > { %700 = vadd.xlane.f32.xlu1 %v699_v13 }
 0x1ab   : > { %694 = vadd.xlane.f32.xlu1 %v693_v52 }
 0x20f   : > { %v662_v55 = vpop.xlane.xlu0 %661 }
 0x210   : > { %v704_v16 = vmul.f32 0.03125, %v662_v55 }
 0x212   : > { %v720_v17 = vadd.f32 1e-05, %v704_v16  ;;  %v916_v16 = vld [vmem:[%s4144_s8 + $0x98] sm:$0xff] }
 0x213   : > { %v665_v18 = vpop.xlane.xlu1 %664 }
 0x214   : > { %v705_v20 = vmul.f32 0.03125, %v665_v18  ;;  %2406 = vrsqrt.f32 %v720_v17 }
 0x216   : > { %v721_v21 = vadd.f32 1e-05, %v705_v20 }
 0x218   : > { %2408 = vrsqrt.f32 %v721_v21  ;;  %v668_v27 = vpop.xlane.xlu0 %667 }
 0x219   : > { %v706_v29 = vmul.f32 0.03125, %v668_v27 }
 0x21b   : > { %v722_v31 = vadd.f32 1e-05, %v706_v29 }
 0x21c   : > { %v659_v35 = vpop.xlane.xlu1 %658  ;;  %v671_v28 = vpop.xlane.xlu0 %670 }
 0x21d   : > { %2410 = vrsqrt.f32 %v722_v31  ;;  %v703_v38 = vmul.f32 0.03125, %v659_v35  ;;  %v707_v42 = vmul.f32 0.03125, %v671_v28  ;;  %v2395_v35 = vld [vmem:[%s4141_s5 + $0x18] sm:$0xff]   ;;  %v2396_v28 = vld [vmem:[%s4141_s5 + $0x60] sm:$0xff]  }
 0x21e   : > { %v2407_v39 = vpop.eup %2406  ;;  %2247 = vmatpush3.bf16.msra.mxu0 %v2395_v35  ;;  %2363 = vmatpush3.bf16.msra.mxu1 %v2395_v35 }
 0x21f   : > { %v719_v41 = vadd.f32 1e-05, %v703_v38  ;;  %v752_v34 = vmul.f32 %v2407_v39, %v2599_v60  ;;  %v723_v51 = vadd.f32 1e-05, %v707_v42  ;;  %v2721_v60 = vld [vmem:[%s4140_s4] ss:$0 sm:$0xff]  ;;  %2248 = vmatprep.subr.bf16.mxu0 %v2396_v28  ;;  %2356 = vmatprep.subr.bf16.mxu1 %v2396_v28 }
 0x220   : > { %v674_v43 = vpop.xlane.xlu1 %673  ;;  %v677_v44 = vpop.xlane.xlu0 %676  ;;  %v2399_v28 = vld [vmem:[%s4141_s5 + $0x28] sm:$0xff]  }
 0x221   : > { %2412 = vrsqrt.f32 %v719_v41  ;;  %v708_v53 = vmul.f32 0.03125, %v674_v43  ;;  %v709_v54 = vmul.f32 0.03125, %v677_v44  ;;  %v775_v2 = vmul.f32 %v2713_v48, %v752_v34  ;;  %v915_v41 = vld [vmem:[%s4144_s8 + $0x90] sm:$0xff]  ;;  %v1006_v34 = vld [vmem:[%s4144_s8 + $0x118] sm:$0xff] }
 0x222   : > { %v2409_v47 = vpop.eup %2408  ;;  %2414 = vrsqrt.f32 %v723_v51 }
 0x223   : > { %v753_v49 = vmul.f32 %v2409_v47, %v2604_v0  ;;  %v724_v45 = vadd.f32 1e-05, %v708_v53  ;;  %v725_v4 = vadd.f32 1e-05, %v709_v54  ;;  %v2733_v12 = vadd.f32 %v2721_v60, %v775_v2 }
 0x224   : > { %v680_v56 = vpop.xlane.xlu1 %679  ;;  %v656_v58 = vpop.xlane.xlu0 %655 }
 0x225   : > { %v776_v59 = vmul.f32 %v2713_v48, %v753_v49  ;;  %v710_v61 = vmul.f32 0.03125, %v680_v56  ;;  %v702_v1 = vmul.f32 0.03125, %v656_v58  ;;  %4187 = vst [vmem:[#allocation4_spill] sm:$0xff] %v2733_v12  ;;  %v932_v30 = vmul.f32 %v916_v16, %v2733_v12  ;;  %v1049_v58 = vld [vmem:[%s4144_s8 + $0x198] sm:$0xff] }
 0x226   : > { %v958_v31 = vrot.slane %v2733_v12, 1  ;;  %v831_v42 = vrot.slane %v2733_v12, 7  ;;  %v2782_v49 = vmul.f32 %v1179_v24, %v2733_v12 }
 0x227   : > { %v2411_v40 = vpop.eup %2410  ;;  %v718_v0 = vadd.f32 1e-05, %v702_v1  ;;  %v2724_v3 = vadd.f32 %v2721_v60, %v776_v59  ;;  %v726_v46 = vadd.f32 1e-05, %v710_v61 }
 0x228   : > { %v686_v5 = vpop.xlane.xlu0 %685  ;;  %v754_v13 = vmul.f32 %v2411_v40, %v2611_v7 }
 0x229   : > { %4186 = vst [vmem:[#allocation3_spill] sm:$0xff] %v2724_v3  ;;  %v712_v50 = vmul.f32 0.03125, %v686_v5  ;;  %2416 = vrsqrt.f32 %v718_v0  ;;  %v960_v7 = vrot.slane %v2724_v3, 1  ;;  %v833_v21 = vrot.slane %v2724_v3, 7  ;;  %v1140_v0 = vld [vmem:[%s4144_s8 + $0x310] sm:$0xff]  ;;  %v2398_v5 = vld [vmem:[%s4141_s5 + $0x68] sm:$0xff]  }
 0x22a   : > { %2418 = vrsqrt.f32 %v724_v45  ;;  %v777_v25 = vmul.f32 %v2713_v48, %v754_v13  ;;  %v2796_v59 = vmul.f32 %v1180_v33, %v2724_v3 }
 0x22b   : > { %v2413_v52 = vpop.eup %2412  ;;  %v728_v55 = vadd.f32 1e-05, %v712_v50  ;;  %2420 = vrsqrt.f32 %v725_v4  ;;  %v2776_v47 = vsel %vm954_vm2, %v958_v31, %v960_v7  ;;  %v2790_v56 = vsel %vm827_vm3, %v831_v42, %v833_v21  ;;  %v2397_v4 = vld [vmem:[%s4141_s5 + $0x20] sm:$0xff]  }
 0x22c   : > { %v751_v17 = vmul.f32 %v2413_v52, %v2619_v14  ;;  %v689_v18 = vpop.xlane.xlu1 %688  ;;  %2422 = vrsqrt.f32 %v726_v46  ;;  %v917_v14 = vld [vmem:[%s4144_s8 + $0xa0] sm:$0xff]  ;;  %4188 = vst [vmem:[#allocation5_spill] sm:$0xff] %v2776_v47  ;;  %v2415_v53 = vpop.eup %2414  ;;  %4189 = vst [vmem:[#allocation6_spill] sm:$0xff] %v2790_v56  ;;  %v2799_v61 = vadd.f32 %v2721_v60, %v777_v25  ;;  %v1022_v50 = vmul.f32 %v1006_v34, %v2776_v47 }
 0x22d   : > { %v713_v20 = vmul.f32 0.03125, %v689_v18  ;;  %2424 = vrsqrt.f32 %v728_v55  ;;  %v2785_v51 = vmul.f32 %v917_v14, %v2724_v3  ;;  %v755_v15 = vmul.f32 %v2415_v53, %v2614_v10  ;;  %2249 = vmatpush3.bf16.msra.mxu0 %v2397_v4  ;;  %v1048_v10 = vld [vmem:[%s4144_s8 + $0x190] sm:$0xff]  ;;  %2364 = vmatpush3.bf16.msra.mxu1 %v2397_v4  ;;  %v1107_v3 = vld [vmem:[%s4144_s8 + $0x2d8] sm:$0xff] }
 0x22e   : > { %v774_v27 = vmul.f32 %v2713_v48, %v751_v17  ;;  %v698_v29 = vpop.xlane.xlu0 %697  ;;  %4190 = vst [vmem:[#allocation7_spill] sm:$0xff] %v2799_v61  ;;  %v1005_v17 = vld [vmem:[%s4144_s8 + $0x110] sm:$0xff]  ;;  %v2822_v18 = vmul.f32 %v1049_v58, %v2790_v56  ;;  %2250 = vmatprep.subr.bf16.mxu0 %v2398_v5  ;;  %v2846_v35 = vmul.f32 %v918_v11, %v2799_v61 }
 0x22f   : > { %v729_v38 = vadd.f32 1e-05, %v713_v20  ;;  %v716_v39 = vmul.f32 0.03125, %v698_v29  ;;  %v2832_v29 = vmul.f32 %v1140_v0, %v2790_v56  ;;  %2357 = vmatprep.subr.bf16.mxu1 %v2398_v5  ;;  %v1178_v5 = vld [vmem:[%s4144_s8 + $0x380] sm:$0xff]  ;;  %v926_v56 = vld [vmem:[%s4144_s8 + $0xe8] sm:$0xff] }
 0x230   : > { %v2771_v43 = vadd.f32 %v2721_v60, %v774_v27  ;;  %v683_v44 = vpop.xlane.xlu1 %682  ;;  %v1181_v27 = vld [vmem:[%s4144_s8 + $0x398] sm:$0xff] }
 0x231   : > { %2426 = vrsqrt.f32 %v729_v38  ;;  %v732_v54 = vadd.f32 1e-05, %v716_v39  ;;  %v711_v1 = vmul.f32 0.03125, %v683_v44  ;;  %v2400_v38 = vld [vmem:[%s4141_s5 + $0x70] sm:$0xff]   ;;  %v2857_v44 = vmul.f32 %v2713_v48, %v755_v15  ;;  %2251 = vmatpush3.bf16.msra.mxu0 %v2399_v28  ;;  %2365 = vmatpush3.bf16.msra.mxu1 %v2399_v28 }
 0x232   : > { %v692_v2 = vpop.xlane.xlu0 %691  ;;  %v931_v40 = vmul.f32 %v915_v41, %v2771_v43  ;;  %v956_v45 = vrot.slane %v2771_v43, 1  ;;  %v829_v9 = vrot.slane %v2771_v43, 7  ;;  %v2864_v58 = vmul.f32 %v1181_v27, %v2799_v61  ;;  %2252 = vmatprep.subr.bf16.mxu0 %v2400_v38  ;;  %2358 = vmatprep.subr.bf16.mxu1 %v2400_v38 }
 0x233   : > { %2428 = vrsqrt.f32 %v732_v54  ;;  %v714_v46 = vmul.f32 0.03125, %v692_v2  ;;  %v2417_v13 = vpop.eup %2416  ;;  %v727_v52 = vadd.f32 1e-05, %v711_v1  ;;  %v914_v54 = vld [vmem:[%s4144_s8 + $0x88] sm:$0xff]  ;;  %v835_v1 = vrot.slane %v2799_v61, 7 }
 0x234   : > { %v701_v55 = vpop.xlane.xlu1 %700  ;;  %v946_v16 = vpack.c.bf16 %v932_v30, %v931_v40  ;;  %v2419_v20 = vpop.eup %2418  ;;  %v750_v24 = vmul.f32 %v2417_v13, %v2637_v26  ;;  %v2838_v26 = vsel %vm954_vm2, %v956_v45, %v958_v31  ;;  %v2843_v33 = vsel %vm827_vm3, %v829_v9, %v831_v42 }
 0x235   : > { %v730_v14 = vadd.f32 1e-05, %v714_v46  ;;  %v717_v25 = vmul.f32 0.03125, %v701_v55  ;;  %v2421_v30 = vpop.eup %2420  ;;  %2430 = vrsqrt.f32 %v727_v52  ;;  %4191 = vst [vmem:[#allocation8_spill] sm:$0xff] %v2838_v26  ;;  %v1021_v42 = vmul.f32 %v1005_v17, %v2838_v26  ;;  %v2402_v52 = vld [vmem:[%s4141_s5 + $0x78] sm:$0xff]   ;;  %v1004_v17 = vld [vmem:[%s4144_s8 + $0x108] sm:$0xff] }
 0x236   : > { %1268 = vrot.lane.b32.xlu1 %v946_v16, %s2446_s20  ;;  %v2423_v39 = vpop.eup %2422  ;;  %v773_v31 = vmul.f32 %v2713_v48, %v750_v24  ;;  %v1064_v53 = vmul.f32 %v1048_v10, %v2843_v33  ;;  %v756_v46 = vmul.f32 %v2419_v20, %v2631_v23  ;;  %v757_v11 = vmul.f32 %v2421_v30, %v2625_v19 }
 0x237   : > { %2432 = vrsqrt.f32 %v730_v14  ;;  %v733_v41 = vadd.f32 1e-05, %v717_v25  ;;  %v2425_v2 = vpop.eup %2424  ;;  %v1036_v0 = vpack.c.bf16 %v1022_v50, %v1021_v42  ;;  %v758_v13 = vmul.f32 %v2423_v39, %v2643_v36  ;;  %v2401_v50 = vld [vmem:[%s4141_s5 + $0x30] sm:$0xff]   ;;  %v1003_v36 = vld [vmem:[%s4144_s8 + $0x100] sm:$0xff] }
 0x238   : > { %v695_v34 = vpop.xlane.xlu1 %694  ;;  %v2868_v4 = vadd.f32 %v2721_v60, %v773_v31  ;;  %v947_v15 = vpack.c.bf16 %v2846_v35, %v2785_v51  ;;  %v760_v24 = vmul.f32 %v2425_v2, %v2649_v32  ;;  %v1079_v25 = vpack.c.bf16 %v2822_v18, %v1064_v53  ;;  %2253 = vmatpush3.bf16.msra.mxu0 %v2401_v50  ;;  %v1096_v32 = vld [vmem:[%s4144_s8 + $0x280] sm:$0xff] }
 0x239   : > { %2434 = vrsqrt.f32 %v733_v41  ;;  %v715_v40 = vmul.f32 0.03125, %v695_v34  ;;  %v1194_v10 = vmul.f32 %v1178_v5, %v2771_v43  ;;  %2254 = vmatprep.subr.bf16.mxu0 %v2402_v52  ;;  %2366 = vmatpush3.bf16.msra.mxu1 %v2401_v50  ;;  %v2403_v41 = vld [vmem:[%s4141_s5 + $0x38] sm:$0xff]   ;;  %v779_v42 = vmul.f32 %v2713_v48, %v756_v46  ;;  %v1097_v46 = vld [vmem:[%s4144_s8 + $0x288] sm:$0xff] }
 0x23a   : > { %4192 = vst [vmem:[#allocation9_spill] sm:$0xff] %v2868_v4  ;;  %1292 = vrot.lane.b32.xlu1 %v1036_v0, %s2447_s13  ;;  %v930_v19 = vmul.f32 %v914_v54, %v2868_v4  ;;  %v955_v23 = vrot.slane %v2868_v4, 1  ;;  %v828_v20 = vrot.slane %v2868_v4, 7  ;;  %2359 = vmatprep.subr.bf16.mxu1 %v2402_v52  ;;  %v780_v34 = vmul.f32 %v2713_v48, %v757_v11  ;;  %v1224_v4 = vld [vmem:[%s4144_s8 + $0x430] sm:$0xff] }
 0x23b   : > { %v2427_v55 = vpop.eup %2426  ;;  %v731_v16 = vadd.f32 1e-05, %v715_v40  ;;  %v781_v2 = vmul.f32 %v2713_v48, %v758_v13  ;;  %v1210_v50 = vpack.c.bf16 %v2782_v49, %v1194_v10  ;;  %v1138_v49 = vld [vmem:[%s4144_s8 + $0x300] sm:$0xff] }
 0x23c   : > { %v761_v14 = vmul.f32 %v2427_v55, %v2661_v57  ;;  %v945_v30 = vpack.c.bf16 %v930_v19, %v2745_v22  ;;  %v957_v28 = vsel %vm954_vm2, %v955_v23, %v956_v45  ;;  %v1002_v38 = vsel %vm954_vm2, 0.0, %v955_v23  ;;  %v1046_v22 = vld [vmem:[%s4144_s8 + $0x180] sm:$0xff]  ;;  %v1047_v45 = vld [vmem:[%s4144_s8 + $0x188] sm:$0xff]  ;;  %2255 = vmatpush3.bf16.msra.mxu0 %v2403_v41 }
 0x23d   : > { %v2429_v27 = vpop.eup %2428  ;;  %2436 = vrsqrt.f32 %v731_v16  ;;  %v1019_v39 = vmul.f32 %v1003_v36, %v1002_v38  ;;  %v1020_v31 = vmul.f32 %v1004_v17, %v957_v28  ;;  %v2927_v53 = vsel %vm827_vm3, 0.0, %v828_v20  ;;  %2367 = vmatpush3.bf16.msra.mxu1 %v2403_v41 }
 0x23e   : > { %v784_v57 = vmul.f32 %v2713_v48, %v761_v14  ;;  %v764_v18 = vmul.f32 %v2429_v27, %v2668_v63  ;;  %1316 = vrot.lane.b32.xlu1 %v1079_v25, %s2448_s28  ;;  %1266 = vrot.lane.b32.xlu0 %v945_v30, %s2446_s20  ;;  %v2924_v63 = vsel %vm827_vm3, %v828_v20, %v829_v9  ;;  %v2940_v9 = vld [vmem:[%s4141_s5 + $0x80] sm:$0xff]   ;;  %v1139_v30 = vld [vmem:[%s4144_s8 + $0x308] sm:$0xff] }
 0x23f   : > { %4193 = vst [vmem:[#allocation10_spill] sm:$0xff] %v2927_v53  ;;  %v2431_v54 = vpop.eup %2430  ;;  %v1035_v5 = vpack.c.bf16 %v1020_v31, %v1019_v39  ;;  %4195 = vst [vmem:[#allocation12_spill] sm:$0xff] %v2940_v9  ;;  %v1112_v13 = vmul.f32 %v1096_v32, %v957_v28  ;;  %v1062_v52 = vmul.f32 %v1046_v22, %v2927_v53  ;;  %2332 = vmatprep.subr.bf16.mxu0 %v2940_v9  ;;  %v920_v28 = vld [vmem:[%s4144_s8 + $0xb8] sm:$0xff]  ;;  %v919_v31 = vld [vmem:[%s4144_s8 + $0xb0] sm:$0xff] }
 0x240   : > { %v2931_v40 = vadd.f32 %v2721_v60, %v784_v57  ;;  %v787_v0 = vmul.f32 %v2713_v48, %v764_v18  ;;  %v1063_v55 = vmul.f32 %v1047_v45, %v2924_v63  ;;  %v2947_v16 = vadd.f32 %v2721_v60, %v2857_v44  ;;  %v1182_v22 = vld [vmem:[%s4144_s8 + $0x3a0] sm:$0xff]  ;;  %v1183_v45 = vld [vmem:[%s4144_s8 + $0x3a8] sm:$0xff] }
 0x241   : > { %v2433_v11 = vpop.eup %2432  ;;  %v783_v19 = vmul.f32 %v2713_v48, %v760_v24  ;;  %v2959_v20 = vadd.f32 %v2721_v60, %v779_v42  ;;  %v1113_v44 = vmul.f32 %v1097_v46, %v2838_v26  ;;  %v1211_v24 = vpack.c.bf16 %v2864_v58, %v2796_v59 }
 0x242   : > { %4194 = vst [vmem:[#allocation11_spill] sm:$0xff] %v2931_v40  ;;  %4196 = vst [vmem:[#allocation13_spill] sm:$0xff] %v2947_v16  ;;  %v2951_v23 = vadd.f32 %v2721_v60, %v787_v0  ;;  %v762_v36 = vmul.f32 %v2433_v11, %v2665_v62  ;;  %1290 = vrot.lane.b32.xlu1 %v1035_v5, %s2447_s13  ;;  %1386 = vrot.lane.b32.xlu0 %v1210_v50, %s2448_s28  ;;  %v962_v62 = vrot.slane %v2799_v61, 1  ;;  %v1141_v0 = vld [vmem:[%s4144_s8 + $0x318] sm:$0xff] }
 0x243   : > { %v2435_v17 = vpop.eup %2434  ;;  %v2968_v14 = vadd.f32 %v2721_v60, %v780_v34  ;;  %v759_v25 = vmul.f32 %v2431_v54, %v2658_v37  ;;  %v2980_v38 = vadd.f32 %v2721_v60, %v781_v2  ;;  %v1128_v32 = vpack.c.bf16 %v1113_v44, %v1112_v13 }
 0x244   : > { %4197 = vst [vmem:[#allocation14_spill] sm:$0xff] %v2951_v23  ;;  %v785_v10 = vmul.f32 %v2713_v48, %v762_v36  ;;  %v765_v27 = vmul.f32 %v2435_v17, %v2684_v8  ;;  %v1078_v57 = vpack.c.bf16 %v1063_v55, %v1062_v52  ;;  %v1154_v18 = vmul.f32 %v1138_v49, %v2924_v63  ;;  %v1098_v49 = vld [vmem:[%s4144_s8 + $0x290] sm:$0xff] }
 0x245   : > { %4198 = vst [vmem:[#allocation15_spill] sm:$0xff] %v2980_v38  ;;  %v2984_v37 = vadd.f32 %v2721_v60, %v783_v19  ;;  %v964_v41 = vrot.slane %v2947_v16, 1  ;;  %v1155_v34 = vmul.f32 %v1139_v30, %v2843_v33  ;;  %v936_v54 = vmul.f32 %v920_v28, %v2959_v20 }
 0x246   : > { %v2987_v8 = vadd.f32 %v2721_v60, %v785_v10  ;;  %v788_v39 = vmul.f32 %v2713_v48, %v765_v27  ;;  %1338 = vrot.lane.b32.xlu0 %v1128_v32, %s2446_s20  ;;  %1314 = vrot.lane.b32.xlu1 %v1078_v57, %s2448_s28  ;;  %v3009_v2 = vsel %vm827_vm3, %v833_v21, %v835_v1  ;;  %v966_v5 = vrot.slane %v2959_v20, 1  ;;  %v1099_v21 = vld [vmem:[%s4144_s8 + $0x298] sm:$0xff] }
 0x247   : > { %v2437_v42 = vpop.eup %2436  ;;  %4200 = vst [vmem:[#allocation17_spill] sm:$0xff] %v3009_v2  ;;  %v782_v46 = vmul.f32 %v2713_v48, %v759_v25  ;;  %v963_v13 = vsel %vm954_vm2, %v960_v7, %v962_v62  ;;  %v1170_v52 = vpack.c.bf16 %v1155_v34, %v1154_v18  ;;  %v935_v55 = vmul.f32 %v919_v31, %v2947_v16  ;;  %v1220_v7 = vld [vmem:[%s4144_s8 + $0x410] sm:$0xff]  ;;  %v1008_v25 = vld [vmem:[%s4144_s8 + $0x128] sm:$0xff] }
 0x248   : > { %4199 = vst [vmem:[#allocation16_spill] sm:$0xff] %v2987_v8  ;;  %v3017_v11 = vadd.f32 %v2721_v60, %v788_v39  ;;  %v763_v50 = vmul.f32 %v2437_v42, %v2681_v6  ;;  %v1198_v19 = vmul.f32 %v1182_v22, %v2947_v16  ;;  %v1199_v36 = vmul.f32 %v1183_v45, %v2959_v20  ;;  %v1221_v22 = vld [vmem:[%s4144_s8 + $0x418] sm:$0xff] }
 0x249   : > { %v1157_v17 = vmul.f32 %v1141_v0, %v3009_v2  ;;  %v965_v44 = vsel %vm954_vm2, %v962_v62, %v964_v41  ;;  %v837_v10 = vrot.slane %v2947_v16, 7  ;;  %v3050_v27 = vsel %vm954_vm2, %v964_v41, %v966_v5  ;;  %v1101_v62 = vld [vmem:[%s4144_s8 + $0x2a8] sm:$0xff] }
 0x24a   : > { %v786_v6 = vmul.f32 %v2713_v48, %v763_v50  ;;  %1362 = vrot.lane.b32.xlu0 %v1170_v52, %s2447_s13  ;;  %1270 = vrot.lane.b32.xlu1 %v947_v15, %s2446_s20  ;;  %v3047_v48 = vmul.f32 %v1099_v21, %v963_v13  ;;  %v839_v30 = vrot.slane %v2959_v20, 7  ;;  %v968_v28 = vrot.slane %v2968_v14, 1  ;;  %v1007_v15 = vld [vmem:[%s4144_s8 + $0x120] sm:$0xff]  ;;  %v1051_v41 = vld [vmem:[%s4144_s8 + $0x1a8] sm:$0xff] }
 0x24b   : > { %v3058_v32 = vadd.f32 %v2721_v60, %v782_v46  ;;  %v948_v51 = vpack.c.bf16 %v936_v54, %v935_v55  ;;  %v3064_v35 = vmul.f32 %v1098_v49, %v2776_v47  ;;  %v1212_v18 = vpack.c.bf16 %v1199_v36, %v1198_v19  ;;  %v1143_v54 = vld [vmem:[%s4144_s8 + $0x328] sm:$0xff]  ;;  %v1010_v46 = vld [vmem:[%s4144_s8 + $0x138] sm:$0xff]  ;;  %v1050_v55 = vld [vmem:[%s4144_s8 + $0x1a0] sm:$0xff] }
 0x24c   : > { %v3061_v57 = vadd.f32 %v2721_v60, %v786_v6  ;;  %v3069_v39 = vmul.f32 %v1220_v7, %v963_v13  ;;  %v3071_v31 = vmul.f32 %v1008_v25, %v965_v44  ;;  %v1100_v60 = vld [vmem:[%s4144_s8 + $0x2a0] sm:$0xff]  ;;  %v3082_v45 = vsel %vm827_vm3, %v835_v1, %v837_v10  ;;  %v1009_v1 = vld [vmem:[%s4144_s8 + $0x130] sm:$0xff]  ;;  %v1053_v6 = vld [vmem:[%s4144_s8 + $0x1b8] sm:$0xff] }
 0x24d   : > { %v3088_v42 = vmul.f32 %v1101_v62, %v3050_v27  ;;  %v3091_v34 = vsel %vm827_vm3, %v837_v10, %v839_v30  ;;  %v3097_v0 = vsel %vm954_vm2, %v966_v5, %v968_v28  ;;  %v841_v50 = vrot.slane %v2968_v14, 7  ;;  %v1186_v19 = vld [vmem:[%s4144_s8 + $0x3c0] sm:$0xff]  ;;  %v1052_v49 = vld [vmem:[%s4144_s8 + $0x1b0] sm:$0xff]  ;;  %v1187_v10 = vld [vmem:[%s4144_s8 + $0x3c8] sm:$0xff] }
 0x24e   : > { %1388 = vrot.lane.b32.xlu0 %v1211_v24, %s2448_s28  ;;  %1272 = vrot.lane.b32.xlu1 %v948_v51, %s2446_s20  ;;  %v1171_v5 = vpack.c.bf16 %v1157_v17, %v2832_v29  ;;  %v1129_v21 = vpack.c.bf16 %v3047_v48, %v3064_v35  ;;  %v1023_v52 = vmul.f32 %v1007_v15, %v963_v13  ;;  %v970_v36 = vrot.slane %v2980_v38, 1  ;;  %v1142_v24 = vld [vmem:[%s4144_s8 + $0x320] sm:$0xff]  ;;  %v1185_v48 = vld [vmem:[%s4144_s8 + $0x3b8] sm:$0xff] }
 0x24f   : > { %v3121_v59 = vmul.f32 %v1221_v22, %v965_v44  ;;  %v3123_v58 = vmul.f32 %v1100_v60, %v965_v44  ;;  %v3126_v29 = vmul.f32 %v1051_v41, %v3082_v45  ;;  %v3132_v13 = vsel %vm827_vm3, %v839_v30, %v841_v50  ;;  %v1103_v15 = vld [vmem:[%s4144_s8 + $0x2b8] sm:$0xff]  ;;  %v1184_v41 = vld [vmem:[%s4144_s8 + $0x3b0] sm:$0xff] }
 0x250   : > { %v1037_v17 = vpack.c.bf16 %v3071_v31, %v1023_v52  ;;  %v3142_v7 = vmul.f32 %v1143_v54, %v3091_v34  ;;  %v3145_v44 = vmul.f32 %v1009_v1, %v3050_v27  ;;  %v3148_v25 = vmul.f32 %v1010_v46, %v3097_v0  ;;  %v922_v31 = vld [vmem:[%s4144_s8 + $0xc8] sm:$0xff]  ;;  %v1102_v46 = vld [vmem:[%s4144_s8 + $0x2b0] sm:$0xff] }
 0x251   : > { %v1130_v62 = vpack.c.bf16 %v3088_v42, %v3123_v58  ;;  %v1066_v30 = vmul.f32 %v1050_v55, %v3009_v2  ;;  %v3160_v51 = vmul.f32 %v1186_v19, %v3058_v32  ;;  %v3163_v35 = vsel %vm954_vm2, %v968_v28, %v970_v36  ;;  %v1106_v2 = vld [vmem:[%s4144_s8 + $0x2d0] sm:$0xff] }
 0x252   : > { %1390 = vrot.lane.b32.xlu0 %v1212_v18, %s2448_s28  ;;  %1364 = vrot.lane.b32.xlu1 %v1171_v5, %s2447_s13  ;;  %v3174_v22 = vmul.f32 %v1142_v24, %v3082_v45  ;;  %v3177_v60 = vmul.f32 %v1052_v49, %v3091_v34  ;;  %v3180_v28 = vmul.f32 %v1053_v6, %v3132_v13  ;;  %v4147_v42 = vrot.slane %v2980_v38, 7  ;;  %v921_v5 = vld [vmem:[%s4144_s8 + $0xc0] sm:$0xff]  ;;  %v1144_v24 = vld [vmem:[%s4144_s8 + $0x330] sm:$0xff] }
 0x253   : > { %v1080_v54 = vpack.c.bf16 %v3126_v29, %v1066_v30  ;;  %v3188_v18 = vmul.f32 %v1187_v10, %v2984_v37  ;;  %v3191_v1 = vmul.f32 %v1185_v48, %v2980_v38  ;;  %v972_v52 = vrot.slane %v3058_v32, 1  ;;  %v923_v10 = vld [vmem:[%s4144_s8 + $0xd0] sm:$0xff]  ;;  %v924_v48 = vld [vmem:[%s4144_s8 + $0xd8] sm:$0xff]  ;;  %v1105_v49 = vld [vmem:[%s4144_s8 + $0x2c8] sm:$0xff] }
 0x254   : > { %v1172_v55 = vpack.c.bf16 %v3142_v7, %v3174_v22  ;;  %v1038_v19 = vpack.c.bf16 %v3148_v25, %v3145_v44  ;;  %v3205_v58 = vmul.f32 %v1103_v15, %v3163_v35  ;;  %v3208_v29 = vmul.f32 %v922_v31, %v2980_v38  ;;  %v1145_v44 = vld [vmem:[%s4144_s8 + $0x338] sm:$0xff]  ;;  %v1188_v31 = vld [vmem:[%s4144_s8 + $0x3d0] sm:$0xff] }
 0x255   : > { %v3216_v6 = vmul.f32 %v1184_v41, %v2968_v14  ;;  %v3221_v7 = vsel %vm827_vm3, %v841_v50, %v4147_v42  ;;  %v974_v25 = vrot.slane %v2984_v37, 1  ;;  %v3238_v30 = vmul.f32 %v1102_v46, %v3097_v0  ;;  %v1189_v22 = vld [vmem:[%s4144_s8 + $0x3d8] sm:$0xff]  ;;  %v1191_v42 = vld [vmem:[%s4144_s8 + $0x3e8] sm:$0xff] }
 0x256   : > { %1340 = vrot.lane.b32.xlu0 %v1129_v21, %s2446_s20  ;;  %1294 = vrot.lane.b32.xlu1 %v1037_v17, %s2447_s13  ;;  %v3241_v15 = vmul.f32 %v921_v5, %v2968_v14  ;;  %v3252_v17 = vmul.f32 %v1144_v24, %v3132_v13  ;;  %v3255_v41 = vsel %vm954_vm2, %v970_v36, %v972_v52  ;;  %v1104_v5 = vld [vmem:[%s4144_s8 + $0x2c0] sm:$0xff]  ;;  %v4206_v26 = vrot.slane %v2984_v37, 7 }
 0x257   : > { %v3258_v46 = vsel %vm954_vm2, %v972_v52, %v974_v25  ;;  %v1190_v21 = vld [vmem:[%s4144_s8 + $0x3e0] sm:$0xff]  ;;  %v3274_v52 = vmul.f32 %v1145_v44, %v3221_v7  ;;  %v3277_v50 = vmul.f32 %v923_v10, %v3058_v32  ;;  %v3283_v16 = vmul.f32 %v924_v48, %v2984_v37  ;;  %v1012_v48 = vld [vmem:[%s4144_s8 + $0x148] sm:$0xff] }
 0x258   : > { %v3287_v24 = vmul.f32 %v1188_v31, %v2931_v40  ;;  %v3290_v36 = vmul.f32 %v1189_v22, %v2987_v8  ;;  %v3295_v44 = vmul.f32 %v1104_v5, %v3255_v41  ;;  %v3298_v10 = vmul.f32 %v1105_v49, %v3258_v46  ;;  %v925_v5 = vld [vmem:[%s4144_s8 + $0xe0] sm:$0xff] }
 0x259   : > { %v976_v31 = vrot.slane %v2931_v40, 1  ;;  %v3305_v61 = vmul.f32 %v1190_v21, %v3061_v57  ;;  %v849_v49 = vrot.slane %v2931_v40, 7  ;;  %v927_v21 = vld [vmem:[%s4144_s8 + $0xf0] sm:$0xff]  ;;  %v3338_v12 = vmul.f32 %v1012_v48, %v3255_v41 }
 0x25a   : > { %4201 = vst [vmem:[#allocation18_spill] sm:$0xff] %v3287_v24  ;;  %1342 = vrot.lane.b32.xlu0 %v1130_v62, %s2446_s20  ;;  %1318 = vrot.lane.b32.xlu1 %v1080_v54, %s2448_s28  ;;  %v3311_v54 = vmul.f32 %v1191_v42, %v2951_v23  ;;  %v978_v42 = vrot.slane %v2987_v8, 1  ;;  %v4205_v22 = vrot.slane %v2980_v38, 7  ;;  %v1148_v48 = vld [vmem:[%s4144_s8 + $0x350] sm:$0xff]  ;;  %v928_v24 = vld [vmem:[%s4144_s8 + $0xf8] sm:$0xff]  ;;  %v851_v47 = vrot.slane %v2987_v8, 7 }
 0x25b   : > { %4202 = vst [vmem:[#allocation19_spill] sm:$0xff] %v3305_v61  ;;  %v3325_v62 = vsel %vm954_vm2, %v974_v25, %v976_v31  ;;  %v4204_v25 = vrot.slane %v3058_v32, 7  ;;  %v3352_v53 = vsel %vm827_vm3, %v4206_v26, %v849_v49  ;;  %v3369_v26 = vmul.f32 %v926_v56, %v2987_v8  ;;  %v1149_v61 = vld [vmem:[%s4144_s8 + $0x358] sm:$0xff]  ;;  %v1015_v56 = vld [vmem:[%s4144_s8 + $0x160] sm:$0xff] }
 0x25c   : > { %4203 = vst [vmem:[#allocation20_spill] sm:$0xff] %v3311_v54  ;;  %v3392_v8 = vsel %vm827_vm3, %v849_v49, %v851_v47  ;;  %v982_v38 = vrot.slane %v2951_v23, 1  ;;  %v1108_v49 = vld [vmem:[%s4144_s8 + $0x2e0] sm:$0xff]  ;;  %v4216_v54 = vpack.c.bf16 %v3188_v18, %v3160_v51 }
 0x25d   : > { %v3345_v9 = vsel %vm827_vm3, %v4205_v22, %v4204_v25  ;;  %v3363_v22 = vsel %vm954_vm2, %v976_v31, %v978_v42  ;;  %v3366_v25 = vmul.f32 %v925_v5, %v2931_v40  ;;  %4208 = vst [vmem:[#allocation22_spill] sm:$0xff] %v3369_v26  ;;  %v3384_v5 = vmul.f32 %v927_v21, %v3061_v57 }
 0x25e   : > { %1366 = vrot.lane.b32.xlu0 %v1172_v55, %s2447_s13  ;;  %1296 = vrot.lane.b32.xlu1 %v1038_v19, %s2447_s13  ;;  %v3378_v19 = vmul.f32 %v1106_v2, %v3325_v62  ;;  %v3381_v31 = vmul.f32 %v1107_v3, %v3363_v22  ;;  %v3395_v55 = vmul.f32 %v1148_v48, %v3352_v53  ;;  %v980_v40 = vrot.slane %v3061_v57, 1  ;;  %v1109_v48 = vld [vmem:[%s4144_s8 + $0x2e8] sm:$0xff] }
 0x25f   : > { %4207 = vst [vmem:[#allocation21_spill] sm:$0xff] %v3366_v25  ;;  %4211 = vst [vmem:[#allocation25_spill] sm:$0xff] %v3384_v5  ;;  %v3398_v2 = vmul.f32 %v928_v24, %v2951_v23  ;;  %v3403_v21 = vmul.f32 %v1149_v61, %v3392_v8  ;;  %v1016_v24 = vld [vmem:[%s4144_s8 + $0x168] sm:$0xff]  ;;  %v4215_v61 = vpack.c.bf16 %v3180_v28, %v3177_v60  ;;  %v853_v26 = vrot.slane %v3061_v57, 7  ;;  %v1150_v60 = vld [vmem:[%s4144_s8 + $0x360] sm:$0xff] }
 0x260   : > { %4209 = vst [vmem:[#allocation23_spill] sm:$0xff] %v3378_v19  ;;  %4210 = vst [vmem:[#allocation24_spill] sm:$0xff] %v3381_v31  ;;  %v3427_v25 = vmul.f32 %v1015_v56, %v3363_v22  ;;  %v855_v19 = vrot.slane %v2951_v23, 7  ;;  %v3437_v51 = vsel %vm954_vm2, %v978_v42, %v980_v40  ;;  %v3440_v18 = vsel %vm954_vm2, %v980_v40, %v982_v38  ;;  %v1110_v40 = vld [vmem:[%s4144_s8 + $0x2f0] sm:$0xff]  ;;  %v1111_v5 = vld [vmem:[%s4144_s8 + $0x2f8] sm:$0xff] }
 0x261   : > { %4212 = vst [vmem:[#allocation26_spill] sm:$0xff] %v3395_v55  ;;  %4213 = vst [vmem:[#allocation27_spill] sm:$0xff] %v3398_v2  ;;  %v984_v56 = vrot.slane %v3017_v11, 1  ;;  %v3450_v3 = vmul.f32 %v1109_v48, %v3440_v18  ;;  %v3453_v28 = vmul.f32 %v1016_v24, %v3437_v51  ;;  %v3456_v42 = vsel %vm827_vm3, %v851_v47, %v853_v26  ;;  %v1059_v55 = vld [vmem:[%s4144_s8 + $0x1e8] sm:$0xff] }
 0x262   : > { %4214 = vst [vmem:[#allocation28_spill] sm:$0xff] %v3403_v21  ;;  %1320 = vrot.lane.b32.xlu1 %v4215_v61, %s2448_s28  ;;  %1394 = vrot.lane.b32.xlu0 %v4216_v54, %s2448_s28  ;;  %4217 = vst [vmem:[#allocation29_spill] sm:$0xff] %v3427_v25  ;;  %v1151_v54 = vld [vmem:[%s4144_s8 + $0x368] sm:$0xff]  ;;  %v3447_v61 = vmul.f32 %v1108_v49, %v3437_v51  ;;  %v1058_v49 = vld [vmem:[%s4144_s8 + $0x1e0] sm:$0xff]  ;;  %v3468_v48 = vsel %vm827_vm3, %v853_v26, %v855_v19  ;;  %v1043_v23 = vrot.slane %v3017_v11, 7 }
 0x263   : > { %4219 = vst [vmem:[#allocation31_spill] sm:$0xff] %v3450_v3  ;;  %4220 = vst [vmem:[#allocation32_spill] sm:$0xff] %v3453_v28  ;;  %v3471_v24 = vmul.f32 %v1150_v60, %v3456_v42  ;;  %v3474_v47 = vsel %vm954_vm2, %v982_v38, %v984_v56  ;;  %v3477_v2 = vsel %vm954_vm2, %v984_v56, 0.0  ;;  %v1152_v21 = vld [vmem:[%s4144_s8 + $0x370] sm:$0xff]  ;;  %v4223_v26 = vpack.c.bf16 %v3191_v1, %v3216_v6  ;;  %v1153_v1 = vld [vmem:[%s4144_s8 + $0x378] sm:$0xff] }
 0x264   : > { %4218 = vst [vmem:[#allocation30_spill] sm:$0xff] %v3447_v61  ;;  %4222 = vst [vmem:[#allocation34_spill] sm:$0xff] %v3477_v2  ;;  %v4224_v38 = vpack.c.bf16 %v3205_v58, %v3238_v30  ;;  %v3498_v31 = vmul.f32 %v1151_v54, %v3468_v48  ;;  %v1017_v58 = vld [vmem:[%s4144_s8 + $0x170] sm:$0xff]  ;;  %v4226_v6 = vrot.slane %v2984_v37, 7  ;;  %v4227_v30 = vrot.slane %v3058_v32, 7  ;;  %v1055_v54 = vld [vmem:[%s4144_s8 + $0x1c8] sm:$0xff] }
 0x265   : > { %4221 = vst [vmem:[#allocation33_spill] sm:$0xff] %v3471_v24  ;;  %v3521_v56 = vmul.f32 %v1111_v5, %v3477_v2  ;;  %v3524_v60 = vmul.f32 %v1058_v49, %v3392_v8  ;;  %v1018_v25 = vld [vmem:[%s4144_s8 + $0x178] sm:$0xff]  ;;  %v1044_v28 = vsel %vm827_vm3, %v855_v19, %v1043_v23  ;;  %v1060_v5 = vld [vmem:[%s4144_s8 + $0x1f0] sm:$0xff]  ;;  %v4229_v3 = vpack.c.bf16 %v3208_v29, %v3241_v15 }
 0x266   : > { %1392 = vrot.lane.b32.xlu1 %v4223_v26, %s2448_s28  ;;  %1344 = vrot.lane.b32.xlu0 %v4224_v38, %s2446_s20  ;;  %4225 = vst [vmem:[#allocation35_spill] sm:$0xff] %v3498_v31  ;;  %v3512_v26 = vsel %vm827_vm3, %v4227_v30, %v4226_v6  ;;  %v3518_v38 = vmul.f32 %v1110_v40, %v3474_v47  ;;  %v1137_v40 = vsel %vm827_vm3, %v1043_v23, 0.0  ;;  %v1061_v49 = vld [vmem:[%s4144_s8 + $0x1f8] sm:$0xff]  ;;  %v875_v2 = vld [vmem:[%s4144_s8 + $0x10] sm:$0xff] }
 0x267   : > { %v3532_v30 = vmul.f32 %v1059_v55, %v3456_v42  ;;  %v1146_v55 = vld [vmem:[%s4144_s8 + $0x340] sm:$0xff]  ;;  %v1147_v23 = vld [vmem:[%s4144_s8 + $0x348] sm:$0xff]  ;;  %v3553_v6 = vmul.f32 %v1152_v21, %v1044_v28  ;;  %v3555_v24 = vmul.f32 %v1153_v1, %v1137_v40  ;;  %v3558_v31 = vmul.f32 %v1017_v58, %v3440_v18  ;;  %v876_v61 = vld [vmem:[%s4144_s8 + $0x18] sm:$0xff] }
 0x268   : > { %v4230_v19 = vpack.c.bf16 %v3274_v52, %v3252_v17  ;;  %v1011_v21 = vld [vmem:[%s4144_s8 + $0x140] sm:$0xff]  ;;  %v3578_v58 = vmul.f32 %v1055_v54, %v3345_v9  ;;  %v3583_v15 = vmul.f32 %v1018_v25, %v3474_v47  ;;  %v3588_v52 = vmul.f32 %v1060_v5, %v3468_v48  ;;  %v879_v54 = vld [vmem:[%s4144_s8 + $0x30] sm:$0xff]  ;;  %v880_v25 = vld [vmem:[%s4144_s8 + $0x38] sm:$0xff] }
 0x269   : > { %4228 = vst [vmem:[#allocation36_spill] sm:$0xff] %v3553_v6  ;;  %v1054_v1 = vld [vmem:[%s4144_s8 + $0x1c0] sm:$0xff]  ;;  %v3593_v40 = vmul.f32 %v875_v2, %v2924_v63  ;;  %v1163_v17 = vmul.f32 %v1147_v23, %v3512_v26  ;;  %v1014_v63 = vld [vmem:[%s4144_s8 + $0x158] sm:$0xff]  ;;  %v3612_v5 = vmul.f32 %v876_v61, %v2843_v33  ;;  %v1056_v23 = vld [vmem:[%s4144_s8 + $0x1d0] sm:$0xff]  ;;  %v4231_v61 = vpack.c.bf16 %v3298_v10, %v3295_v44 }
 0x26a   : > { %1274 = vrot.lane.b32.xlu1 %v4229_v3, %s2446_s20  ;;  %1368 = vrot.lane.b32.xlu0 %v4230_v19, %s2447_s13  ;;  %v3590_v3 = vmul.f32 %v1061_v49, %v1044_v28  ;;  %v1162_v19 = vmul.f32 %v1146_v55, %v3345_v9  ;;  %v1013_v28 = vld [vmem:[%s4144_s8 + $0x150] sm:$0xff]  ;;  %v1027_v49 = vmul.f32 %v1011_v21, %v3163_v35  ;;  %v1222_v2 = vld [vmem:[%s4144_s8 + $0x420] sm:$0xff] }
 0x26b   : > { %v1070_v55 = vmul.f32 %v1054_v1, %v3221_v7  ;;  %v1223_v33 = vld [vmem:[%s4144_s8 + $0x428] sm:$0xff]  ;;  %v4232_v21 = vpack.c.bf16 %v3283_v16, %v3277_v50  ;;  %v906_v1 = vpack.c.bf16 %v3612_v5, %v3593_v40  ;;  %v3640_v6 = vmul.f32 %v879_v54, %v3082_v45  ;;  %v1225_v44 = vld [vmem:[%s4144_s8 + $0x438] sm:$0xff] }
 0x26c   : > { %v3643_v29 = vmul.f32 %v880_v25, %v3091_v34  ;;  %v1039_v16 = vpack.c.bf16 %v3338_v12, %v1027_v49  ;;  %v1029_v10 = vmul.f32 %v1013_v28, %v3258_v46  ;;  %v1251_v45 = vpack.c.bf16 %v3121_v59, %v3069_v39  ;;  %v1226_v34 = vld [vmem:[%s4144_s8 + $0x440] sm:$0xff]  ;;  %v1227_v54 = vld [vmem:[%s4144_s8 + $0x448] sm:$0xff]  ;;  %v1228_v28 = vld [vmem:[%s4144_s8 + $0x450] sm:$0xff] }
 0x26d   : > { %v1082_v50 = vpack.c.bf16 %v3578_v58, %v1070_v55  ;;  %v1174_v25 = vpack.c.bf16 %v1163_v17, %v1162_v19  ;;  %v3665_v12 = vmul.f32 %v1222_v2, %v3050_v27  ;;  %v3668_v58 = vmul.f32 %v1223_v33, %v3097_v0  ;;  %v1229_v49 = vld [vmem:[%s4144_s8 + $0x458] sm:$0xff]  ;;  %v881_v17 = vld [vmem:[%s4144_s8 + $0x40] sm:$0xff]  ;;  %v1231_v33 = vld [vmem:[%s4144_s8 + $0x468] sm:$0xff] }
 0x26e   : > { %1346 = vrot.lane.b32.xlu0 %v4231_v61, %s2446_s20  ;;  %1276 = vrot.lane.b32.xlu1 %v4232_v21, %s2446_s20  ;;  %v1030_v19 = vmul.f32 %v1014_v63, %v3325_v62  ;;  %v1072_v27 = vmul.f32 %v1056_v23, %v3512_v26  ;;  %v3682_v2 = vmul.f32 %v1224_v4, %v3163_v35  ;;  %v1230_v55 = vld [vmem:[%s4144_s8 + $0x460] sm:$0xff]  ;;  %v882_v63 = vld [vmem:[%s4144_s8 + $0x48] sm:$0xff]  ;;  %v4278_v40 = vld [vmem:[#allocation6_spill] sm:$0xff] }
 0x26f   : > { %v3685_v0 = vmul.f32 %v1225_v44, %v3255_v41  ;;  %v1252_v4 = vpack.c.bf16 %v3668_v58, %v3665_v12  ;;  %v3701_v35 = vmul.f32 %v1226_v34, %v3258_v46  ;;  %v3704_v41 = vmul.f32 %v1227_v54, %v3325_v62  ;;  %v883_v23 = vld [vmem:[%s4144_s8 + $0x50] sm:$0xff]  ;;  %v884_v21 = vld [vmem:[%s4144_s8 + $0x58] sm:$0xff]  ;;  %v4237_v62 = vld [vmem:[#allocation16_spill] sm:$0xff] }
 0x270   : > { %v3718_v46 = vmul.f32 %v1229_v49, %v3437_v51  ;;  %v3725_v54 = vmul.f32 %v1230_v55, %v3440_v18  ;;  %v3731_v61 = vmul.f32 %v881_v17, %v3132_v13  ;;  %v3742_v49 = vmul.f32 %v883_v23, %v3345_v9  ;;  %v886_v13 = vld [vmem:[%s4144_s8 + $0x68] sm:$0xff]  ;;  %v888_v17 = vld [vmem:[%s4144_s8 + $0x78] sm:$0xff] }
 0x271   : > { %v1253_v44 = vpack.c.bf16 %v3685_v0, %v3682_v2  ;;  %v3745_v18 = vmul.f32 %v884_v21, %v3512_v26  ;;  %v4233_v9 = vld [vmem:[#allocation18_spill] sm:$0xff]  ;;  %v1040_v26 = vpack.c.bf16 %v1030_v19, %v1029_v10  ;;  %v3778_v19 = vmul.f32 %v886_v13, %v3392_v8  ;;  %v1232_v0 = vld [vmem:[%s4144_s8 + $0x470] sm:$0xff] }
 0x272   : > { %1298 = vrot.lane.b32.xlu1 %v1039_v16, %s2447_s13  ;;  %1370 = vrot.lane.b32.xlu0 %v1174_v25, %s2447_s13  ;;  %v3715_v16 = vmul.f32 %v1228_v28, %v3363_v22  ;;  %v3728_v25 = vmul.f32 %v1231_v33, %v3474_v47  ;;  %v885_v22 = vld [vmem:[%s4144_s8 + $0x60] sm:$0xff]  ;;  %v3739_v28 = vmul.f32 %v882_v63, %v3221_v7  ;;  %v887_v47 = vld [vmem:[%s4144_s8 + $0x70] sm:$0xff]  ;;  %v4238_v55 = vld [vmem:[#allocation14_spill] sm:$0xff] }
 0x273   : > { %v4234_v7 = vpack.c.bf16 %v3290_v36, %v4233_v9  ;;  %v4235_v33 = vld [vmem:[#allocation15_spill] sm:$0xff]  ;;  %v1057_v23 = vld [vmem:[%s4144_s8 + $0x1d8] sm:$0xff]  ;;  %v3775_v10 = vmul.f32 %v885_v22, %v3352_v53  ;;  %v3784_v63 = vmul.f32 %v887_v47, %v3456_v42  ;;  %v4239_v22 = vld [vmem:[#allocation20_spill] sm:$0xff] }
 0x274   : > { %v4236_v36 = vld [vmem:[#allocation11_spill] sm:$0xff]  ;;  %v1073_v8 = vmul.f32 %v1057_v23, %v3352_v53  ;;  %v4242_v47 = vld [vmem:[#allocation24_spill] sm:$0xff]  ;;  %v4249_v23 = vld [vmem:[#allocation26_spill] sm:$0xff] }
 0x275   : > { %v4240_v9 = vld [vmem:[#allocation19_spill] sm:$0xff]  ;;  %v4248_v53 = vld [vmem:[#allocation28_spill] sm:$0xff] }
 0x276   : > { %1322 = vrot.lane.b32.xlu1 %v1082_v50, %s2448_s28  ;;  %1396 = vrot.lane.b32.xlu0 %v4234_v7, %s2448_s28  ;;  %v3781_v7 = vmul.f32 %v888_v17, %v3468_v48  ;;  %v4241_v51 = vpack.c.bf16 %v4239_v22, %v4240_v9  ;;  %v1083_v13 = vpack.c.bf16 %v1073_v8, %v1072_v27  ;;  %v4243_v17 = vld [vmem:[#allocation23_spill] sm:$0xff]  ;;  %v4245_v50 = vld [vmem:[#allocation22_spill] sm:$0xff]  ;;  %v4246_v9 = vld [vmem:[#allocation21_spill] sm:$0xff] }
 0x277   : > { %v4250_v22 = vpack.c.bf16 %v4248_v53, %v4249_v23  ;;  %v4251_v42 = vld [vmem:[#allocation27_spill] sm:$0xff]  ;;  %v4252_v27 = vld [vmem:[#allocation25_spill] sm:$0xff]  ;;  %v4255_v48 = vld [vmem:[#allocation30_spill] sm:$0xff] }
 0x278   : > { %v4253_v8 = vpack.c.bf16 %v4251_v42, %v4252_v27  ;;  %v1192_v42 = vld [vmem:[%s4144_s8 + $0x3f0] sm:$0xff]  ;;  %v1193_v23 = vld [vmem:[%s4144_s8 + $0x3f8] sm:$0xff] }
 0x279   : > { %v1208_v27 = vmul.f32 %v1192_v42, %v3017_v11 }
 0x27a   : > { %1300 = vrot.lane.b32.xlu1 %v1040_v26, %s2447_s13  ;;  %1398 = vrot.lane.b32.xlu0 %v4241_v51, %s2448_s28  ;;  %v4244_v26 = vpack.c.bf16 %v4242_v47, %v4243_v17  ;;  %v4247_v51 = vpack.c.bf16 %v4245_v50, %v4246_v9  ;;  %v4257_v17 = vld [vmem:[#allocation32_spill] sm:$0xff]  ;;  %v4260_v9 = vld [vmem:[#allocation35_spill] sm:$0xff] }
 0x27e   : > { %1324 = vrot.lane.b32.xlu1 %v1083_v13, %s2448_s28  ;;  %1348 = vrot.lane.b32.xlu0 %v4244_v26, %s2446_s20  ;;  %v4254_v13 = vld [vmem:[#allocation31_spill] sm:$0xff]  ;;  %v4258_v26 = vld [vmem:[#allocation29_spill] sm:$0xff] }
 0x27f   : > { %v4256_v47 = vpack.c.bf16 %v4254_v13, %v4255_v48  ;;  %v4259_v50 = vpack.c.bf16 %v4257_v17, %v4258_v26  ;;  %v4263_v48 = vpack.c.bf16 %v3521_v56, %v3518_v38  ;;  %v4265_v13 = vld [vmem:[#allocation36_spill] sm:$0xff]  ;;  %v4267_v17 = vpack.c.bf16 %v3583_v15, %v3558_v31  ;;  %v873_v31 = vld [vmem:[%s4144_s8] sm:$0xff] }
 0x280   : > { %v889_v42 = vmul.f32 0.0, %v873_v31 }
 0x282   : > { %1278 = vrot.lane.b32.xlu1 %v4247_v51, %s2446_s20  ;;  %1372 = vrot.lane.b32.xlu0 %v4250_v22, %s2447_s13  ;;  %v4261_v51 = vld [vmem:[#allocation33_spill] sm:$0xff]  ;;  %v4264_v22 = vpack.c.bf16 %v3532_v30, %v3524_v60  ;;  %v4268_v60 = vpack.c.bf16 %v3590_v3, %v3588_v52  ;;  %v1218_v3 = vld [vmem:[%s4144_s8 + $0x400] sm:$0xff] }
 0x283   : > { %v4262_v53 = vpack.c.bf16 %v4260_v9, %v4261_v51  ;;  %v4269_v51 = vld [vmem:[#allocation10_spill] sm:$0xff] }
 0x286   : > { %1280 = vrot.lane.b32.xlu1 %v4253_v8, %s2446_s20  ;;  %1350 = vrot.lane.b32.xlu0 %v4256_v47, %s2446_s20  ;;  %v1209_v8 = vmul.f32 0.0, %v1193_v23  ;;  %v4266_v47 = vpack.c.bf16 %v3555_v24, %v4265_v13  ;;  %v874_v24 = vld [vmem:[%s4144_s8 + $0x8] sm:$0xff]  ;;  %v4271_v13 = vld [vmem:[#allocation9_spill] sm:$0xff] }
 0x288   : > { %v1217_v56 = vpack.c.bf16 %v1209_v8, %v1208_v27  ;;  %v4270_v27 = vld [vmem:[#allocation8_spill] sm:$0xff] }
 0x289   : > { %v1234_v8 = vmul.f32 %v1218_v3, %v4270_v27  ;;  %v4276_v27 = vld [vmem:[#allocation3_spill] sm:$0xff] }
 0x28a   : > { %1302 = vrot.lane.b32.xlu1 %v4259_v50, %s2447_s13  ;;  %1374 = vrot.lane.b32.xlu0 %v4262_v53, %s2447_s13  ;;  %v890_v53 = vmul.f32 %v874_v24, %v4269_v51  ;;  %v4273_v51 = vld [vmem:[#allocation5_spill] sm:$0xff] }
 0x28e   : > { %1352 = vrot.lane.b32.xlu0 %v4263_v48, %s2446_s20  ;;  %1326 = vrot.lane.b32.xlu1 %v4264_v22, %s2448_s28  ;;  %v1219_v48 = vld [vmem:[%s4144_s8 + $0x408] sm:$0xff]  ;;  %v905_v22 = vpack.c.bf16 %v890_v53, %v889_v42 }
 0x28f   : > { %v1235_v21 = vmul.f32 %v1219_v48, %v4273_v51  ;;  %v2405_v42 = vld [vmem:[%s4141_s5 + $0x88] sm:$0xff]  }
 0x292   : > { %1376 = vrot.lane.b32.xlu0 %v4266_v47, %s2447_s13  ;;  %1304 = vrot.lane.b32.xlu1 %v4267_v17, %s2447_s13  ;;  %v4272_v47 = vpack.c.bf16 %v2771_v43, %v4271_v13  ;;  %s2179_s13 = sshll.u32 %s2172_s16, 1 }
 0x293   : > { %p358_p4 = scmp.lt.s32.totalorder %s2179_s13, 3 }
 0x295   : > { %s4298_s13 = smov (!%p358_p4, %s2179_s13), 3 }
 0x296   : > { %1400 = vrot.lane.b32.xlu0 %v1217_v56, %s2448_s28  ;;  %1328 = vrot.lane.b32.xlu1 %v4268_v60, %s2448_s28  ;;  %s4107_s25 = scalar_lea.vmem %s4146_s10, %s4298_s13 }
 0x2a8   : > { %v1269_v38 = vpop.permute.xlu1 %1268 }
 0x2ac   : > { %v1293_v30 = vpop.permute.xlu1 %1292 }
 0x2b0   : > { %v1317_v26 = vpop.permute.xlu1 %1316  ;;  %v1267_v50 = vpop.permute.xlu0 %1266 }
 0x2b1   : > { %v1404_v24 = vsel %vm556_vm1, %v905_v22, %v1267_v50  ;;  %v4274_v22 = vld [vmem:[#allocation12_spill] sm:$0xff] }
 0x2b4   : > { %v1291_v15 = vpop.permute.xlu1 %1290  ;;  %v1387_v9 = vpop.permute.xlu0 %1386 }
 0x2b5   : > { %v1428_v34 = vsel %vm1426_vm4, %v1404_v24, %v1291_v15 }
 0x2b8   : > { %v1315_v23 = vpop.permute.xlu1 %1314  ;;  %v1339_v52 = vpop.permute.xlu0 %1338 }
 0x2b9   : > { %v1470_v17 = vsel %vm556_vm1, %v4272_v47, %v1339_v52  ;;  %v1445_v43 = vsel %vm1443_vm5, %v1428_v34, %v1315_v23  ;;  %v1250_v52 = vpack.c.bf16 %v1235_v21, %v1234_v8  ;;  %v878_v21 = vld [vmem:[%s4144_s8 + $0x28] sm:$0xff]  ;;  %v1407_v8 = vsel %vm556_vm1, %v906_v1, %v1269_v38  ;;  %v4279_v1 = vld [vmem:[#allocation7_spill] sm:$0xff]  ;;  %v4280_v38 = vld [vmem:[#allocation13_spill] sm:$0xff] }
 0x2ba   : > { %v1430_v59 = vsel %vm1426_vm4, %v1407_v8, %v1293_v30 }
 0x2bc   : > { %v1271_v56 = vpop.permute.xlu1 %1270  ;;  %v1363_v60 = vpop.permute.xlu0 %1362 }
 0x2bd   : > { %v1493_v31 = vsel %vm1426_vm4, %v1470_v17, %v1363_v60  ;;  %v4277_v60 = vld [vmem:[#allocation17_spill] sm:$0xff] }
 0x2be   : > { %v1509_v53 = vsel %vm1443_vm5, %v1493_v31, %v1387_v9  ;;  %v4275_v9 = vld [vmem:[#allocation4_spill] sm:$0xff]  ;;  %v894_v24 = vmul.f32 %v878_v21, %v4277_v60  ;;  %v1088_v31 = vpack.c.bf16 %v4280_v38, %v4279_v1 }
 0x2bf   : > { %1739 = vmatprep.mubr.bf16.mxu0 %v1509_v53  ;;  %v1087_v13 = vpack.c.bf16 %v4276_v27, %v4275_v9  ;;  %v4284_v27 = vld [vmem:[#allocation34_spill] sm:$0xff] }
 0x2c0   : > { %v1273_v3 = vpop.permute.xlu1 %1272  ;;  %1740 = vmatmul.mubr.bf16.vlgmr.msra.gmra.mrb[16].mxu0 %v1445_v43  ;;  %v1389_v50 = vpop.permute.xlu0 %1388 }
 0x2c1   : > { %2333 = vmatpush3.bf16.msra.mxu0 %v4274_v22  ;;  %2336 = vmatprep.mubr.msk.bf16.mxu0 %vm556_vm1, %v1250_v52 }
 0x2c2   : > { %2334 = vmatprep.subr.bf16.mxu0 %v2405_v42 }
 0x2c4   : > { %v1365_v48 = vpop.permute.xlu1 %1364  ;;  %v1391_v15 = vpop.permute.xlu0 %1390 }
 0x2c5   : > { %2335 = vmatpush3.bf16.msra.mxu0 %v2405_v42 }
 0x2c8   : > { %v1295_v47 = vpop.permute.xlu1 %1294  ;;  %2337 = vmatmul.mubr.msk.bf16.vlgmr.msra.gmra.mrb[20].mxu0 %vm556_vm1, %v1251_v45  ;;  %v1341_v34 = vpop.permute.xlu0 %1340  ;;  %v877_v45 = vld [vmem:[%s4144_s8 + $0x20] sm:$0xff] }
 0x2c9   : > { %v1473_v23 = vsel %vm556_vm1, %v1087_v13, %v1341_v34  ;;  %2340 = vmatprep.mubr.msk.bf16.mxu0 %vm556_vm1, %v1252_v4  ;;  %v1448_v4 = vsel %vm1443_vm5, %v1430_v59, %v1317_v26  ;;  %v893_v5 = vmul.f32 %v877_v45, %v4278_v40  ;;  %v4281_v26 = vpack.c.bf16 %v3704_v41, %v3701_v35  ;;  %v1233_v35 = vld [vmem:[%s4144_s8 + $0x478] sm:$0xff] }
 0x2ca   : > { %v1495_v39 = vsel %vm1426_vm4, %v1473_v23, %v1365_v48  ;;  %v1248_v13 = vmul.f32 %v1232_v0, %v4284_v27  ;;  %v4285_v34 = vpack.c.bf16 %v2968_v14, %v2959_v20  ;;  %v4292_v0 = vpack.c.bf16 %v3778_v19, %v3775_v10 }
 0x2cb   : > { %v1512_v17 = vsel %vm1443_vm5, %v1495_v39, %v1389_v50  ;;  %v907_v30 = vpack.c.bf16 %v894_v24, %v893_v5  ;;  %v4293_v27 = vpack.c.bf16 %v3781_v7, %v3784_v63  ;;  %v4294_v10 = vpack.c.bf16 %v3017_v11, %v4238_v55  ;;  %v4008_v55 = vld [vmem:[%s4142_s6] ss:$0 sm:$0xff] }
 0x2cc   : > { %v1319_v12 = vpop.permute.xlu1 %1318  ;;  %1747 = vmatprep.mubr.bf16.mxu1 %v1512_v17  ;;  %v1343_v58 = vpop.permute.xlu0 %1342 }
 0x2cd   : > { %1748 = vmatmul.mubr.bf16.vlgmr.msra.gmra.mrb[0].mxu1 %v1448_v4  ;;  %v1476_v51 = vsel %vm556_vm1, %v1088_v31, %v1343_v58  ;;  %v1410_v52 = vsel %vm556_vm1, %v907_v30, %v1271_v56  ;;  %v4289_v30 = vpack.c.bf16 %v4236_v36, %v2984_v37  ;;  %v4291_v36 = vpack.c.bf16 %v3061_v57, %v4237_v62 }
 0x2ce   : > { %v1432_v22 = vsel %vm1426_vm4, %v1410_v52, %v1295_v47  ;;  %v1249_v47 = vmul.f32 0.0, %v1233_v35 }
 0x2cf   : > { %v1451_v2 = vsel %vm1443_vm5, %v1432_v22, %v1319_v12  ;;  %v4288_v12 = vpack.c.bf16 %v3739_v28, %v3731_v61 }
 0x2d0   : > { %v1297_v53 = vpop.permute.xlu1 %1296  ;;  %2341 = vmatmul.mubr.msk.bf16.gmra.mrb[24].mxu0 %vm556_vm1, %v1253_v44  ;;  %v1367_v42 = vpop.permute.xlu0 %1366  ;;  %v4282_v44 = vpack.c.bf16 %v3718_v46, %v3715_v16  ;;  %v4286_v16 = vpack.c.bf16 %v3643_v29, %v3640_v6  ;;  %v1257_v59 = vpack.c.bf16 %v1249_v47, %v1248_v13  ;;  %v4287_v6 = vpack.c.bf16 %v3058_v32, %v4235_v33 }
 0x2d1   : > { %v1497_v43 = vsel %vm1426_vm4, %v1476_v51, %v1367_v42  ;;  %2344 = vmatprep.mubr.msk.bf16.mxu0 %vm556_vm1, %v4281_v26 }
 0x2d2   : > { %v1515_v50 = vsel %vm1443_vm5, %v1497_v43, %v1391_v15  ;;  %v4283_v15 = vpack.c.bf16 %v3728_v25, %v3725_v54  ;;  %v1413_v46 = vsel %vm556_vm1, %v4286_v16, %v1273_v3 }
 0x2d3   : > { %1755 = vmatprep.mubr.bf16.mxu1 %v1515_v50  ;;  %v1434_v54 = vsel %vm1426_vm4, %v1413_v46, %v1297_v53  ;;  %v4290_v53 = vpack.c.bf16 %v3745_v18, %v3742_v49 }
 0x2d4   : > { %v1321_v48 = vpop.permute.xlu1 %1320  ;;  %v1395_v9 = vpop.permute.xlu0 %1394 }
 0x2d5   : > { %1756 = vmatmul.mubr.bf16.gmra.mrb[4].mxu1 %v1451_v2  ;;  %v1454_v45 = vsel %vm1443_vm5, %v1434_v54, %v1321_v48 }
 0x2d8   : > { %v1393_v41 = vpop.permute.xlu1 %1392  ;;  %2345 = vmatmul.mubr.msk.bf16.gmra.mrb[28].mxu0 %vm556_vm1, %v4282_v44  ;;  %v1345_v56 = vpop.permute.xlu0 %1344 }
 0x2d9   : > { %2348 = vmatprep.mubr.msk.bf16.mxu0 %vm556_vm1, %v4283_v15  ;;  %v1479_v21 = vsel %vm556_vm1, %v4285_v34, %v1345_v56 }
 0x2dc   : > { %v1275_v23 = vpop.permute.xlu1 %1274  ;;  %v1369_v8 = vpop.permute.xlu0 %1368 }
 0x2dd   : > { %v1499_v39 = vsel %vm1426_vm4, %v1479_v21, %v1369_v8  ;;  %v1416_v58 = vsel %vm556_vm1, %v4288_v12, %v1275_v23 }
 0x2de   : > { %v1518_v25 = vsel %vm1443_vm5, %v1499_v39, %v1393_v41 }
 0x2df   : > { %1763 = vmatprep.mubr.bf16.mxu1 %v1518_v25 }
 0x2e0   : > { %v1277_v20 = vpop.permute.xlu1 %1276  ;;  %1764 = vmatmul.mubr.bf16.gmra.mrb[8].mxu1 %v1454_v45  ;;  %2349 = vmatmul.mubr.msk.bf16.gmra.mrb[32].mxu0 %vm556_vm1, %v1257_v59  ;;  %v1347_v14 = vpop.permute.xlu0 %1346 }
 0x2e1   : > { %v1482_v29 = vsel %vm556_vm1, %v4287_v6, %v1347_v14  ;;  %v1419_v42 = vsel %vm556_vm1, %v4290_v53, %v1277_v20 }
 0x2e4   : > { %v1299_v3 = vpop.permute.xlu1 %1298  ;;  %v1371_v17 = vpop.permute.xlu0 %1370 }
 0x2e5   : > { %v1501_v60 = vsel %vm1426_vm4, %v1482_v29, %v1371_v17  ;;  %v1436_v4 = vsel %vm1426_vm4, %v1416_v58, %v1299_v3  ;;  %v4015_v3 = vld [vmem:[%s4143_s7] ss:$0 sm:$0xff] }
 0x2e6   : > { %v1521_v24 = vsel %vm1443_vm5, %v1501_v60, %v1395_v9 }
 0x2e7   : > { %1771 = vmatprep.mubr.bf16.mxu1 %v1521_v24 }
 0x2e8   : > { %v1323_v40 = vpop.permute.xlu1 %1322  ;;  %v1397_v5 = vpop.permute.xlu0 %1396 }
 0x2e9   : > { %v1457_v32 = vsel %vm1443_vm5, %v1436_v4, %v1323_v40 }
 0x2ea   : > { %1772 = vmatmul.mubr.bf16.gmra.mrb[12].mxu1 %v1457_v32 }
 0x2ec   : > { %v1301_v33 = vpop.permute.xlu1 %1300  ;;  %v1399_v1 = vpop.permute.xlu0 %1398 }
 0x2ed   : > { %v1438_v26 = vsel %vm1426_vm4, %v1419_v42, %v1301_v33 }
 0x2f0   : > { %v1325_v38 = vpop.permute.xlu1 %1324  ;;  %v1349_v31 = vpop.permute.xlu0 %1348 }
 0x2f1   : > { %v1485_v51 = vsel %vm556_vm1, %v4289_v30, %v1349_v31  ;;  %v1460_v50 = vsel %vm1443_vm5, %v1438_v26, %v1325_v38 }
 0x2f4   : > { %v1279_v61 = vpop.permute.xlu1 %1278  ;;  %v1373_v28 = vpop.permute.xlu0 %1372 }
 0x2f5   : > { %v1503_v43 = vsel %vm1426_vm4, %v1485_v51, %v1373_v28  ;;  %v1422_v35 = vsel %vm556_vm1, %v4292_v0, %v1279_v61 }
 0x2f6   : > { %v1524_v52 = vsel %vm1443_vm5, %v1503_v43, %v1397_v5 }
 0x2f7   : > { %1779 = vmatprep.mubr.bf16.mxu1 %v1524_v52 }
 0x2f8   : > { %v1281_v22 = vpop.permute.xlu1 %1280  ;;  %1780 = vmatmul.mubr.bf16.gmra.mrb[16].mxu1 %v1460_v50  ;;  %v1351_v37 = vpop.permute.xlu0 %1350 }
 0x2f9   : > { %v1488_v48 = vsel %vm556_vm1, %v4291_v36, %v1351_v37  ;;  %v1425_v13 = vsel %vm556_vm1, %v4293_v27, %v1281_v22 }
 0x2fc   : > { %v1303_v49 = vpop.permute.xlu1 %1302  ;;  %v1375_v18 = vpop.permute.xlu0 %1374 }
 0x2fd   : > { %v1505_v9 = vsel %vm1426_vm4, %v1488_v48, %v1375_v18  ;;  %v1440_v41 = vsel %vm1426_vm4, %v1422_v35, %v1303_v49 }
 0x2fe   : > { %v1527_v2 = vsel %vm1443_vm5, %v1505_v9, %v1399_v1 }
 0x2ff   : > { %1787 = vmatprep.mubr.bf16.mxu1 %v1527_v2 }
 0x300   : > { %v1327_v44 = vpop.permute.xlu1 %1326  ;;  %v1353_v56 = vpop.permute.xlu0 %1352 }
 0x301   : > { %v1463_v57 = vsel %vm1443_vm5, %v1440_v41, %v1327_v44  ;;  %v1491_v19 = vsel %vm556_vm1, %v4294_v10, %v1353_v56 }
 0x302   : > { %1788 = vmatmul.mubr.bf16.gmra.mrb[20].mxu1 %v1463_v57 }
 0x304   : > { %v1305_v62 = vpop.permute.xlu1 %1304  ;;  %v1377_v15 = vpop.permute.xlu0 %1376 }
 0x305   : > { %v1442_v47 = vsel %vm1426_vm4, %v1425_v13, %v1305_v62  ;;  %v1507_v34 = vsel %vm1426_vm4, %v1491_v19, %v1377_v15 }
 0x308   : > { %v1329_v21 = vpop.permute.xlu1 %1328  ;;  %v1401_v23 = vpop.permute.xlu0 %1400 }
 0x309   : > { %v1530_v8 = vsel %vm1443_vm5, %v1507_v34, %v1401_v23  ;;  %v1466_v16 = vsel %vm1443_vm5, %v1442_v47, %v1329_v21 }
 0x30a   : > { %1795 = vmatprep.mubr.bf16.mxu1 %v1530_v8 }
 0x30b   : > { %1796 = vmatmul.mubr.bf16.gmra.mrb[24].mxu1 %v1466_v16 }
 0x393   : > { %v2256_v63 = vpop.f32.mrb[16].mxu0 }
 0x394   : > { %v2257_v7 = vpop.f32.mrb[17].mxu0 }
 0x395   : > { %v2258_v46 = vadd.f32 %v2257_v7, %v2256_v63  ;;  %v2259_v39 = vpop.f32.mrb[18].mxu0 }
 0x396   : > { %v2260_v54 = vpop.f32.mrb[19].mxu0 }
 0x397   : > { %v2261_v11 = vadd.f32 %v2260_v54, %v2259_v39  ;;  %v1742_v59 = vadd.f32 %v2258_v46, %v4008_v55 }
 0x399   : > { %v1745_v6 = vadd.f32 %v2261_v11, %v4008_v55 }
 0x39b   : > { %v2338_v25 = vpop.f32.mrb[20].mxu0 }
 0x39c   : > { %v1838_v45 = vpop.f32.mrb[21].mxu0 }
 0x39d   : > { %v1839_v20 = vadd.f32 %v1838_v45, %v1742_v59  ;;  %v2339_v14 = vpop.f32.mrb[22].mxu0 }
 0x39e   : > { %v1841_v29 = vpop.f32.mrb[23].mxu0 }
 0x39f   : > { %v1901_v17 = vmax.f32 %v1839_v20, 0.0  ;;  %v1842_v60 = vadd.f32 %v1841_v29, %v1745_v6 }
 0x3a0   : > { %v2262_v24 = vpop.f32.mrb[0].mxu1 }
 0x3a1   : > { %v1902_v12 = vmax.f32 %v1842_v60, 0.0  ;;  %v2263_v58 = vpop.f32.mrb[1].mxu1  ;;  %v1925_v4 = vmul.f32 %v4015_v3, %v1901_v17 }
 0x3a2   : > { %v2264_v40 = vadd.f32 %v2263_v58, %v2262_v24  ;;  %v2265_v5 = vpop.f32.mrb[2].mxu1 }
 0x3a3   : > { %v2266_v32 = vpop.f32.mrb[3].mxu1  ;;  %v2342_v33 = vpop.f32.mrb[24].mxu0  ;;  %v1933_v1 = vsel %vm556_vm1, %v1925_v4, 0.0  ;;  %v1926_v38 = vmul.f32 %v4015_v3, %v1902_v12 }
 0x3a4   : > { %v1750_v31 = vadd.f32 %v2264_v40, %v4008_v55  ;;  %v2267_v30 = vadd.f32 %v2266_v32, %v2265_v5  ;;  %v1854_v51 = vpop.f32.mrb[25].mxu0  ;;  %1934 = vadd.xlane.f32.xlu0 %v1933_v1 }
 0x3a5   : > { %v2343_v61 = vpop.f32.mrb[26].mxu0  ;;  %v1936_v28 = vsel %vm556_vm1, %v1926_v38, 0.0 }
 0x3a6   : > { %v1847_v53 = vadd.f32 %v2338_v25, %v1750_v31  ;;  %v1753_v42 = vadd.f32 %v2267_v30, %v4008_v55  ;;  %v1857_v43 = vpop.f32.mrb[27].mxu0  ;;  %1937 = vadd.xlane.f32.xlu1 %v1936_v28 }
 0x3a8   : > { %v1850_v26 = vadd.f32 %v2339_v14, %v1753_v42  ;;  %v2268_v52 = vpop.f32.mrb[4].mxu1  ;;  %v1903_v50 = vmax.f32 %v1847_v53, 0.0 }
 0x3a9   : > { %v2269_v22 = vpop.f32.mrb[5].mxu1 }
 0x3aa   : > { %v2270_v37 = vadd.f32 %v2269_v22, %v2268_v52  ;;  %v2271_v36 = vpop.f32.mrb[6].mxu1  ;;  %v1927_v48 = vmul.f32 %v4015_v3, %v1903_v50  ;;  %v1904_v49 = vmax.f32 %v1850_v26, 0.0 }
 0x3ab   : > { %v2272_v18 = vpop.f32.mrb[7].mxu1  ;;  %v4024_v9 = vpop.f32.mrb[28].mxu0 }
 0x3ac   : > { %v1758_v2 = vadd.f32 %v2270_v37, %v4008_v55  ;;  %v2273_v0 = vadd.f32 %v2272_v18, %v2271_v36  ;;  %v1870_v35 = vpop.f32.mrb[29].mxu0  ;;  %v1939_v41 = vsel %vm556_vm1, %v1927_v48, 0.0  ;;  %v1928_v44 = vmul.f32 %v4015_v3, %v1904_v49 }
 0x3ad   : > { %v4029_v56 = vpop.f32.mrb[30].mxu0  ;;  %1940 = vadd.xlane.f32.xlu0 %v1939_v41 }
 0x3ae   : > { %v1855_v57 = vadd.f32 %v1854_v51, %v1758_v2  ;;  %v1761_v62 = vadd.f32 %v2273_v0, %v4008_v55  ;;  %v1873_v15 = vpop.f32.mrb[31].mxu0  ;;  %v1942_v27 = vsel %vm556_vm1, %v1928_v44, 0.0 }
 0x3af   : > { %1943 = vadd.xlane.f32.xlu1 %v1942_v27 }
 0x3b0   : > { %v1858_v13 = vadd.f32 %v1857_v43, %v1761_v62  ;;  %v1905_v10 = vmax.f32 %v1855_v57, 0.0 }
 0x3b2   : > { %v1929_v19 = vmul.f32 %v4015_v3, %v1905_v10  ;;  %v1906_v47 = vmax.f32 %v1858_v13, 0.0 }
 0x3b3   : > { %v2274_v34 = vpop.f32.mrb[8].mxu1  ;;  %v4034_v21 = vpop.f32.mrb[32].mxu0 }
 0x3b4   : > { %v2275_v23 = vpop.f32.mrb[9].mxu1  ;;  %v4036_v8 = vpop.f32.mrb[33].mxu0  ;;  %v1945_v16 = vsel %vm556_vm1, %v1929_v19, 0.0  ;;  %v1930_v63 = vmul.f32 %v4015_v3, %v1906_v47 }
 0x3b5   : > { %v2276_v7 = vadd.f32 %v2275_v23, %v2274_v34  ;;  %v4040_v46 = vpop.f32.mrb[34].mxu0  ;;  %1946 = vadd.xlane.f32.xlu1 %v1945_v16  ;;  %v2277_v39 = vpop.f32.mrb[10].mxu1 }
 0x3b6   : > { %v2278_v54 = vpop.f32.mrb[11].mxu1  ;;  %v1889_v11 = vpop.f32.mrb[35].mxu0  ;;  %v1948_v45 = vsel %vm556_vm1, %v1930_v63, 0.0 }
 0x3b7   : > { %v1766_v25 = vadd.f32 %v2276_v7, %v4008_v55  ;;  %v2279_v59 = vadd.f32 %v2278_v54, %v2277_v39 }
 0x3b9   : > { %v1863_v20 = vadd.f32 %v2342_v33, %v1766_v25  ;;  %v1769_v14 = vadd.f32 %v2279_v59, %v4008_v55  ;;  %1949 = vadd.xlane.f32.xlu1 %v1948_v45 }
 0x3bb   : > { %v1866_v6 = vadd.f32 %v2343_v61, %v1769_v14  ;;  %v1907_v29 = vmax.f32 %v1863_v20, 0.0 }
 0x3bd   : > { %v2280_v17 = vpop.f32.mrb[12].mxu1  ;;  %v1931_v60 = vmul.f32 %v4015_v3, %v1907_v29  ;;  %v1908_v24 = vmax.f32 %v1866_v6, 0.0 }
 0x3be   : > { %v2281_v12 = vpop.f32.mrb[13].mxu1 }
 0x3bf   : > { %v2282_v58 = vadd.f32 %v2281_v12, %v2280_v17  ;;  %v2283_v4 = vpop.f32.mrb[14].mxu1  ;;  %v1951_v40 = vsel %vm556_vm1, %v1931_v60, 0.0  ;;  %v1932_v5 = vmul.f32 %v4015_v3, %v1908_v24 }
 0x3c0   : > { %1952 = vadd.xlane.f32.xlu1 %v1951_v40  ;;  %v2284_v32 = vpop.f32.mrb[15].mxu1 }
 0x3c1   : > { %v1774_v33 = vadd.f32 %v2282_v58, %v4008_v55  ;;  %v2285_v1 = vadd.f32 %v2284_v32, %v2283_v4  ;;  %v1954_v30 = vsel %vm556_vm1, %v1932_v5, 0.0 }
 0x3c3   : > { %v1871_v38 = vadd.f32 %v1870_v35, %v1774_v33  ;;  %v1777_v31 = vadd.f32 %v2285_v1, %v4008_v55 }
 0x3c4   : > { %1955 = vadd.xlane.f32.xlu1 %v1954_v30 }
 0x3c5   : > { %v1874_v51 = vadd.f32 %v1873_v15, %v1777_v31  ;;  %v1909_v61 = vmax.f32 %v1871_v38, 0.0 }
 0x3c7   : > { %v2032_v28 = vmul.f32 %v4015_v3, %v1909_v61  ;;  %v1910_v53 = vmax.f32 %v1874_v51, 0.0 }
 0x3c9   : > { %v2040_v42 = vsel %vm556_vm1, %v2032_v28, 0.0  ;;  %v2033_v43 = vmul.f32 %v4015_v3, %v1910_v53  ;;  %v4078_v28 = vstv %s1918_s24 }
 0x3ca   : > { %2041 = vadd.xlane.f32.xlu0 %v2040_v42 }
 0x3cb   : > { %v2286_v26 = vpop.f32.mrb[16].mxu1  ;;  %v2043_v37 = vsel %vm556_vm1, %v2033_v43, 0.0 }
 0x3cc   : > { %v2287_v52 = vpop.f32.mrb[17].mxu1 }
 0x3cd   : > { %v2288_v50 = vadd.f32 %v2287_v52, %v2286_v26  ;;  %v2289_v22 = vpop.f32.mrb[18].mxu1 }
 0x3ce   : > { %2044 = vadd.xlane.f32.xlu0 %v2043_v37  ;;  %v2290_v36 = vpop.f32.mrb[19].mxu1 }
 0x3cf   : > { %v1782_v48 = vadd.f32 %v2288_v50, %v4008_v55  ;;  %v2291_v49 = vadd.f32 %v2290_v36, %v2289_v22 }
 0x3d1   : > { %v1879_v18 = vadd.f32 %v4024_v9, %v1782_v48  ;;  %v1785_v2 = vadd.f32 %v2291_v49, %v4008_v55 }
 0x3d3   : > { %v1882_v0 = vadd.f32 %v4029_v56, %v1785_v2  ;;  %v1911_v35 = vmax.f32 %v1879_v18, 0.0 }
 0x3d5   : > { %v2292_v41 = vpop.f32.mrb[20].mxu1  ;;  %v2034_v44 = vmul.f32 %v4015_v3, %v1911_v35  ;;  %v1912_v57 = vmax.f32 %v1882_v0, 0.0 }
 0x3d6   : > { %v2293_v62 = vpop.f32.mrb[21].mxu1 }
 0x3d7   : > { %v2294_v15 = vadd.f32 %v2293_v62, %v2292_v41  ;;  %v2295_v27 = vpop.f32.mrb[22].mxu1  ;;  %v2046_v13 = vsel %vm556_vm1, %v2034_v44, 0.0  ;;  %v2035_v10 = vmul.f32 %v4015_v3, %v1912_v57 }
 0x3d8   : > { %2047 = vadd.xlane.f32.xlu0 %v2046_v13  ;;  %v2296_v19 = vpop.f32.mrb[23].mxu1 }
 0x3d9   : > { %v1790_v9 = vadd.f32 %v2294_v15, %v4008_v55  ;;  %v2297_v47 = vadd.f32 %v2296_v19, %v2295_v27  ;;  %v2049_v23 = vsel %vm556_vm1, %v2035_v10, 0.0 }
 0x3db   : > { %v1887_v34 = vadd.f32 %v4036_v8, %v1790_v9  ;;  %v1793_v56 = vadd.f32 %v2297_v47, %v4008_v55 }
 0x3dc   : > { %2050 = vadd.xlane.f32.xlu0 %v2049_v23 }
 0x3dd   : > { %v1890_v16 = vadd.f32 %v1889_v11, %v1793_v56  ;;  %v1913_v63 = vmax.f32 %v1887_v34, 0.0 }
 0x3de   : > { %v2298_v7 = vpop.f32.mrb[24].mxu1 }
 0x3df   : > { %v2299_v39 = vpop.f32.mrb[25].mxu1  ;;  %v2036_v54 = vmul.f32 %v4015_v3, %v1913_v63  ;;  %v1914_v25 = vmax.f32 %v1890_v16, 0.0 }
 0x3e0   : > { %v2300_v59 = vadd.f32 %v2299_v39, %v2298_v7  ;;  %v2301_v45 = vpop.f32.mrb[26].mxu1 }
 0x3e1   : > { %v2302_v20 = vpop.f32.mrb[27].mxu1  ;;  %v2052_v14 = vsel %vm556_vm1, %v2036_v54, 0.0  ;;  %v2037_v6 = vmul.f32 %v4015_v3, %v1914_v25 }
 0x3e2   : > { %v1798_v8 = vadd.f32 %v2300_v59, %v4008_v55  ;;  %v2303_v29 = vadd.f32 %v2302_v20, %v2301_v45  ;;  %2053 = vadd.xlane.f32.xlu0 %v2052_v14 }
 0x3e3   : > { %v2055_v60 = vsel %vm556_vm1, %v2037_v6, 0.0 }
 0x3e4   : > { %v1895_v17 = vadd.f32 %v4034_v21, %v1798_v8  ;;  %v1801_v11 = vadd.f32 %v2303_v29, %v4008_v55  ;;  %v1974_v21 = vlaneseq }
 0x3e6   : > { %v1898_v24 = vadd.f32 %v4040_v46, %v1801_v11  ;;  %2056 = vadd.xlane.f32.xlu0 %v2055_v60  ;;  %v1915_v12 = vmax.f32 %v1895_v17, 0.0  ;;  %v1975_v55 = vand.u32 127, %v1974_v21  ;;  %v1977_v51 = vshrl.u32 %v1974_v21, 7 }
 0x3e8   : > { %v2038_v58 = vmul.f32 %v4015_v3, %v1915_v12  ;;  %v1916_v4 = vmax.f32 %v1898_v24, 0.0  ;;  %v1980_v46 = vadd.s32 4294967288, %v1975_v55  ;;  %v1987_v31 = vadd.s32 4294967280, %v1975_v55 }
 0x3e9   : > { %v1994_v42 = vadd.s32 4294967272, %v1975_v55  ;;  %v2001_v52 = vadd.s32 4294967264, %v1975_v55  ;;  %v4086_v50 = vsub.s32 %v1975_v55, %v1977_v51  ;;  %v2008_v37 = vadd.s32 4294967256, %v1975_v55 }
 0x3ea   : > { %v2058_v40 = vsel %vm556_vm1, %v2038_v58, 0.0  ;;  %v2039_v5 = vmul.f32 %v4015_v3, %v1916_v4  ;;  %v4080_v53 = vsub.s32 %v1980_v46, %v1977_v51  ;;  %v4083_v43 = vsub.s32 %v1987_v31, %v1977_v51 }
 0x3eb   : > { %2059 = vadd.xlane.f32.xlu0 %v2058_v40  ;;  %v2015_v48 = vadd.s32 4294967248, %v1975_v55  ;;  %v1997_v18 = vsub.s32 %v1994_v42, %v1977_v51  ;;  %v2004_v35 = vsub.s32 %v2001_v52, %v1977_v51  ;;  %v2011_v57 = vsub.s32 %v2008_v37, %v1977_v51 }
 0x3ec   : > { %v2061_v32 = vsel %vm556_vm1, %v2039_v5, 0.0  ;;  %v2022_v15 = vadd.s32 4294967240, %v1975_v55 }
 0x3ed   : > { %2062 = vadd.xlane.f32.xlu1 %v2061_v32  ;;  %v2018_v27 = vsub.s32 %v2015_v48, %v1977_v51 }
 0x3ee   : > { %v2025_v23 = vsub.s32 %v2022_v15, %v1977_v51 }
 0x431   : > { %v1935_v38 = vpop.xlane.xlu0 %1934 }
 0x432   : > { %v1958_v22 = vadd.f32 %v4078_v28, %v1935_v38 }
 0x433   : > { %v1938_v33 = vpop.xlane.xlu1 %1937 }
 0x434   : > { %v1959_v3 = vadd.f32 %v4078_v28, %v1938_v33  ;;  %v1979_v44 = vrot.slane %v1958_v22, %v4086_v50 }
 0x436   : > { %v1984_v49 = vrot.slane %v1959_v3, %v4080_v53 }
 0x438   : > { %v1986_v10 = vsel %vm1985_vm6, %v1984_v49, %v1979_v44 }
 0x43a   : > { %v1941_v61 = vpop.xlane.xlu0 %1940 }
 0x43b   : > { %v1960_v26 = vadd.f32 %v4078_v28, %v1941_v61 }
 0x43c   : > { %v1944_v1 = vpop.xlane.xlu1 %1943 }
 0x43d   : > { %v1961_v2 = vadd.f32 %v4078_v28, %v1944_v1  ;;  %v1991_v0 = vrot.slane %v1960_v26, %v4083_v43 }
 0x43f   : > { %v1998_v19 = vrot.slane %v1961_v2, %v1997_v18  ;;  %v1993_v47 = vsel %vm1992_vm7, %v1991_v0, %v1986_v10 }
 0x441   : > { %v2000_v7 = vsel %vm1999_vm8, %v1998_v19, %v1993_v47 }
 0x442   : > { %v1947_v30 = vpop.xlane.xlu1 %1946 }
 0x443   : > { %v1962_v41 = vadd.f32 %v4078_v28, %v1947_v30 }
 0x445   : > { %v2005_v34 = vrot.slane %v1962_v41, %v2004_v35 }
 0x446   : > { %v1950_v36 = vpop.xlane.xlu1 %1949 }
 0x447   : > { %v1963_v62 = vadd.f32 %v4078_v28, %v1950_v36  ;;  %v2007_v54 = vsel %vm2006_vm9, %v2005_v34, %v2000_v7 }
 0x449   : > { %v2012_v56 = vrot.slane %v1963_v62, %v2011_v57 }
 0x44b   : > { %v2014_v25 = vsel %vm2013_vm10, %v2012_v56, %v2007_v54 }
 0x44d   : > { %v1953_v13 = vpop.xlane.xlu1 %1952 }
 0x44e   : > { %v1964_v9 = vadd.f32 %v4078_v28, %v1953_v13 }
 0x450   : > { %v2019_v16 = vrot.slane %v1964_v9, %v2018_v27 }
 0x451   : > { %v1956_v63 = vpop.xlane.xlu1 %1955 }
 0x452   : > { %v1965_v39 = vadd.f32 %v4078_v28, %v1956_v63  ;;  %v2021_v45 = vsel %vm2020_vm11, %v2019_v16, %v2014_v25 }
 0x454   : > { %v2026_v59 = vrot.slane %v1965_v39, %v2025_v23 }
 0x456   : > { %v2028_v20 = vsel %vm2027_vm12, %v2026_v59, %v2021_v45 }
 0x457   : > { %2031 = vst.msk [vmem:[%s4107_s25] sm:$0x1] %vm2030_vm13, %v2028_v20  ;;  %v2042_v14 = vpop.xlane.xlu0 %2041 }
 0x458   : > { %v2064_v24 = vadd.f32 %v2042_v14, %v4078_v28 }
 0x45a   : > { %v2083_v21 = vrot.slane %v2064_v24, %v4086_v50 }
 0x45b   : > { %v2045_v6 = vpop.xlane.xlu0 %2044 }
 0x45c   : > { %v2065_v11 = vadd.f32 %v2045_v6, %v4078_v28 }
 0x45e   : > { %v2087_v40 = vrot.slane %v2065_v11, %v4080_v53 }
 0x460   : > { %v2088_v1 = vsel %vm1985_vm6, %v2087_v40, %v2083_v21 }
 0x465   : > { %v2048_v8 = vpop.xlane.xlu0 %2047 }
 0x466   : > { %v2066_v60 = vadd.f32 %v2048_v8, %v4078_v28 }
 0x468   : > { %v2092_v32 = vrot.slane %v2066_v60, %v4083_v43 }
 0x469   : > { %v2051_v29 = vpop.xlane.xlu0 %2050 }
 0x46a   : > { %v2067_v12 = vadd.f32 %v2051_v29, %v4078_v28  ;;  %v2093_v31 = vsel %vm1992_vm7, %v2092_v32, %v2088_v1 }
 0x46c   : > { %v2097_v33 = vrot.slane %v2067_v12, %v1997_v18 }
 0x46e   : > { %v2098_v51 = vsel %vm1999_vm8, %v2097_v33, %v2093_v31 }
 0x46f   : > { %v2054_v17 = vpop.xlane.xlu0 %2053 }
 0x470   : > { %v2068_v58 = vadd.f32 %v2054_v17, %v4078_v28 }
 0x472   : > { %v2102_v55 = vrot.slane %v2068_v58, %v2004_v35 }
 0x473   : > { %v2057_v4 = vpop.xlane.xlu0 %2056 }
 0x474   : > { %v2069_v5 = vadd.f32 %v2057_v4, %v4078_v28  ;;  %v2103_v53 = vsel %vm2006_vm9, %v2102_v55, %v2098_v51 }
 0x476   : > { %v2107_v38 = vrot.slane %v2069_v5, %v2011_v57 }
 0x478   : > { %v2060_v46 = vpop.xlane.xlu0 %2059  ;;  %v2108_v43 = vsel %vm2013_vm10, %v2107_v38, %v2103_v53 }
 0x479   : > { %v2070_v30 = vadd.f32 %v2060_v46, %v4078_v28 }
 0x47a   : > { %v2063_v61 = vpop.xlane.xlu1 %2062 }
 0x47b   : > { %v2112_v3 = vrot.slane %v2070_v30, %v2018_v27  ;;  %v2071_v42 = vadd.f32 %v2063_v61, %v4078_v28 }
 0x47d   : > { %v2113_v26 = vsel %vm2020_vm11, %v2112_v3, %v2108_v43  ;;  %v2117_v52 = vrot.slane %v2071_v42, %v2025_v23 }
 0x47f   : > { %v2118_v50 = vsel %vm2027_vm12, %v2117_v52, %v2113_v26 }
 0x480   : > { %2228 = vst.msk [vmem:[%s4107_s25 + $0x1] sm:$0x1] %vm2030_vm13, %v2118_v50 }
 0x481 PF: > { %s21_s15 = sadd.s32 1, %s2444_s15  }
 0x482   : > { %p18_p5 = scmp.ge.s32.totalorder %s21_s15, 4  }
 0x484   :  { %20 = sbr.rel (!%p18_p5) target bundleno = 2 (0x2), region = 91 }

</bundles_post_ra>
